<compile_context>
chip_gen: v7x
topology: tpu7x:2x2x1
jax: 0.10.0
libtpu: 0.0.40
codegen_flags: <defaults>
</compile_context>

<pallas_src>
import functools
import math

import jax
import jax.numpy as jnp
from jax.experimental import pallas as pl
from jax.experimental.pallas import tpu as pltpu

_M_TILES = (1024, 512, 256, 128, 64, 32, 16, 8)        # sublane axis (multiples of 8)
_LANE_TILES = (1024, 768, 512, 256, 128)                # lane axis (multiples of 128)
_Q_TILES = (256, 128, 64, 32, 16, 8)                    # attention query tile


@functools.lru_cache(maxsize=None)
def _vmem_limit():
    """Generation-aware scoped-VMEM request: ~55% of physical per-core VMEM
    (~35 MiB on v7x's 64 MiB, ~70 MiB on v5e/v6e's 128 MiB)."""
    cap = 64 * 1024 * 1024
    try:
        info = pltpu.get_tpu_info()
        cap = int(getattr(info, "vmem_capacity_bytes", cap)) or cap
    except Exception:
        pass
    return int(min(cap * 0.55, 100 * 1024 * 1024))


def _pick_tile(dim, candidates, align):
    """Largest candidate that divides `dim` and satisfies the (8,128) rule;
    falls back to the full dimension (always legal)."""
    for t in candidates:
        if t <= dim and dim % t == 0 and t % align == 0:
            return t
    return dim


# ---------------------------------------------------------------------------
# Tiled linear (+ optional activation) with f32 VMEM accumulator
# ---------------------------------------------------------------------------

def _mm_bias_act_kernel(x_ref, w_ref, b_ref, o_ref, acc_ref, *, activation):
    @pl.when(pl.program_id(2) == 0)
    def _init():
        # Bias folded into the accumulator init (overlaps the first DMA wait
        # instead of sitting on the epilogue/store critical path).
        acc_ref[...] = jnp.broadcast_to(
            b_ref[...].astype(jnp.float32), acc_ref.shape)

    acc_ref[...] += jnp.dot(x_ref[...], w_ref[...],
                            preferred_element_type=jnp.float32)

    @pl.when(pl.program_id(2) == pl.num_programs(2) - 1)
    def _store():
        y = acc_ref[...]
        if activation == "gelu":
            # TODO(synk): HF BERT uses exact erf-GELU; tanh approximation kept
            # for guaranteed EUP lowering (~1e-3 deviation).
            c = 0.7978845608028654  # sqrt(2/pi)
            y = 0.5 * y * (1.0 + jnp.tanh(c * (y + 0.044715 * y * y * y)))
        o_ref[...] = y.astype(o_ref.dtype)


def linear(x, w, b, activation="none", out_dtype=None):
    """y = act(x @ w + b); w stored [in, out]; bf16 operands, f32 accumulation."""
    M, K = x.shape
    N = w.shape[1]
    out_dtype = out_dtype or x.dtype
    tm = _pick_tile(M, _M_TILES, 8)
    tn = _pick_tile(N, _LANE_TILES, 128)
    tk = _pick_tile(K, _LANE_TILES, 128)
    return pl.pallas_call(
        functools.partial(_mm_bias_act_kernel, activation=activation),
        grid=(M // tm, N // tn, K // tk),
        out_shape=jax.ShapeDtypeStruct((M, N), out_dtype),
        in_specs=[
            pl.BlockSpec((tm, tk), lambda i, j, k: (i, k)),
            pl.BlockSpec((tk, tn), lambda i, j, k: (k, j)),
            pl.BlockSpec((1, tn), lambda i, j, k: (0, j)),
        ],
        out_specs=pl.BlockSpec((tm, tn), lambda i, j, k: (i, j)),
        scratch_shapes=[pltpu.VMEM((tm, tn), jnp.float32)],
        compiler_params=pltpu.CompilerParams(
            dimension_semantics=("parallel", "parallel", "arbitrary"),
            vmem_limit_bytes=_vmem_limit()),
    )(x, w, b.reshape(1, N))


# ---------------------------------------------------------------------------
# Tiled linear with fused residual-add + LayerNorm epilogue (LN over full N)
# ---------------------------------------------------------------------------

def _mm_bias_res_ln_kernel(x_ref, w_ref, b_ref, r_ref, g_ref, bb_ref,
                           o_ref, acc_ref, *, eps):
    @pl.when(pl.program_id(1) == 0)
    def _init():
        # Bias + residual folded into accumulator init.
        acc_ref[...] = (jnp.broadcast_to(b_ref[...].astype(jnp.float32),
                                         acc_ref.shape)
                        + r_ref[...].astype(jnp.float32))

    acc_ref[...] += jnp.dot(x_ref[...], w_ref[...],
                            preferred_element_type=jnp.float32)

    @pl.when(pl.program_id(1) == pl.num_programs(1) - 1)
    def _store():
        h = acc_ref[...]
        mu = jnp.mean(h, axis=-1, keepdims=True)
        d = h - mu
        var = jnp.mean(d * d, axis=-1, keepdims=True)
        inv = jax.lax.rsqrt(var + eps)
        o_ref[...] = (d * inv * g_ref[...].astype(jnp.float32)
                      + bb_ref[...].astype(jnp.float32)).astype(o_ref.dtype)


def linear_residual_layernorm(x, w, b, res, gamma, beta, eps=1e-12):
    """LayerNorm((x @ w + b) + res) * gamma + beta, fused into the matmul epilogue."""
    M, K = x.shape
    N = w.shape[1]
    tm = _pick_tile(M, _M_TILES, 8)
    tk = _pick_tile(K, _LANE_TILES, 128)   # tk == K for K<=1024 -> 1-D grid over M
    return pl.pallas_call(
        functools.partial(_mm_bias_res_ln_kernel, eps=eps),
        grid=(M // tm, K // tk),
        out_shape=jax.ShapeDtypeStruct((M, N), x.dtype),
        in_specs=[
            pl.BlockSpec((tm, tk), lambda i, k: (i, k)),
            pl.BlockSpec((tk, N), lambda i, k: (k, 0)),
            pl.BlockSpec((1, N), lambda i, k: (0, 0)),
            pl.BlockSpec((tm, N), lambda i, k: (i, 0)),
            pl.BlockSpec((1, N), lambda i, k: (0, 0)),
            pl.BlockSpec((1, N), lambda i, k: (0, 0)),
        ],
        out_specs=pl.BlockSpec((tm, N), lambda i, k: (i, 0)),
        scratch_shapes=[pltpu.VMEM((tm, N), jnp.float32)],
        compiler_params=pltpu.CompilerParams(
            dimension_semantics=("parallel", "arbitrary"),
            vmem_limit_bytes=_vmem_limit()),
    )(x, w, b.reshape(1, N), res, gamma, beta)


# ---------------------------------------------------------------------------
# Row-tiled add + LayerNorm (embedding LN only; encoder LNs are fused above)
# ---------------------------------------------------------------------------

def _add_ln_kernel(x_ref, r_ref, g_ref, b_ref, o_ref, *, eps):
    h = x_ref[...].astype(jnp.float32) + r_ref[...].astype(jnp.float32)
    mu = jnp.mean(h, axis=-1, keepdims=True)
    d = h - mu
    var = jnp.mean(d * d, axis=-1, keepdims=True)
    inv = jax.lax.rsqrt(var + eps)
    o_ref[...] = (d * inv * g_ref[...].astype(jnp.float32)
                  + b_ref[...].astype(jnp.float32)).astype(o_ref.dtype)


def add_layernorm(x, res, gamma, beta, eps=1e-12):
    M, H = x.shape
    tm = _pick_tile(M, _M_TILES, 8)
    return pl.pallas_call(
        functools.partial(_add_ln_kernel, eps=eps),
        grid=(M // tm,),
        out_shape=jax.ShapeDtypeStruct((M, H), x.dtype),
        in_specs=[
            pl.BlockSpec((tm, H), lambda i: (i, 0)),
            pl.BlockSpec((tm, H), lambda i: (i, 0)),
            pl.BlockSpec((1, H), lambda i: (0, 0)),
            pl.BlockSpec((1, H), lambda i: (0, 0)),
        ],
        out_specs=pl.BlockSpec((tm, H), lambda i: (i, 0)),
        compiler_params=pltpu.CompilerParams(
            dimension_semantics=("parallel",),
            vmem_limit_bytes=_vmem_limit()),
    )(x, res, gamma, beta)


# ---------------------------------------------------------------------------
# Masked multi-head self-attention, reading Q/K/V straight from the [B*S, 3H]
# qkv slab (column-offset BlockSpecs) and writing a lane-dense [B*S, H] slab.
# Query-tiled; packed head blocks give >=128-lane operand/output widths.
# ---------------------------------------------------------------------------

def _attention_kernel(q_ref, k_ref, v_ref, m_ref, o_ref, *, scale, heads, dh):
    mask = m_ref[0]                                     # [1, S] additive bias, f32
    for h in range(heads):                              # static unroll over packed heads
        lo = h * dh
        q = q_ref[:, lo:lo + dh]                        # [tq, dh] bf16
        k = k_ref[:, lo:lo + dh]                        # [S,  dh] bf16
        v = v_ref[:, lo:lo + dh]                        # [S,  dh] bf16
        # K "transpose" expressed as a dot_general contracting on dh.
        s = jax.lax.dot_general(q, k, (((1,), (1,)), ((), ())),
                                preferred_element_type=jnp.float32) * scale
        s = s + mask                                    # broadcast over query rows
        mx = jnp.max(s, axis=-1, keepdims=True)
        e = jnp.exp(s - mx)
        p = e / jnp.sum(e, axis=-1, keepdims=True)
        ctx = jnp.dot(p.astype(v.dtype), v, preferred_element_type=jnp.float32)
        o_ref[:, lo:lo + dh] = ctx.astype(o_ref.dtype)


def _heads_per_block(nh, dh):
    # Smallest head pack whose lane width is a multiple of 128 (fills vregs/MXU);
    # fall back to all heads (block then spans the full head axis).
    for hb in range(1, nh + 1):
        if nh % hb == 0 and (hb * dh) % 128 == 0:
            return hb
    return nh


def attention_qkv(qkv, mask_bias, B, S, H, nh, dh):
    """qkv: [B*S, 3H] (columns [Q|K|V], heads contiguous); mask_bias: [B,1,S].
    Returns the merged-head context as a [B*S, H] slab."""
    M = B * S
    hb = _heads_per_block(nh, dh)
    wb = hb * dh                       # lane width of one packed head block
    nb = H // wb                       # head blocks per Q/K/V section
    tq = _pick_tile(S, _Q_TILES, 8)
    n_qt = S // tq
    scale = 1.0 / math.sqrt(dh)

    # TODO(synk): for S >= 1024 switch to a KV-tiled online-softmax (flash) form
    # with per-query-tile m/l/acc VMEM scratch (v7x 64 MiB VMEM headroom).
    q_spec = pl.BlockSpec((tq, wb), lambda b, h, qi: (b * n_qt + qi, h))
    k_spec = pl.BlockSpec((S, wb), lambda b, h, qi: (b, nb + h))
    v_spec = pl.BlockSpec((S, wb), lambda b, h, qi: (b, 2 * nb + h))
    m_spec = pl.BlockSpec((1, 1, S), lambda b, h, qi: (b, 0, 0))
    o_spec = pl.BlockSpec((tq, wb), lambda b, h, qi: (b * n_qt + qi, h))

    return pl.pallas_call(
        functools.partial(_attention_kernel, scale=scale, heads=hb, dh=dh),
        grid=(B, nb, n_qt),
        out_shape=jax.ShapeDtypeStruct((M, H), qkv.dtype),
        in_specs=[q_spec, k_spec, v_spec, m_spec],
        out_specs=o_spec,
        compiler_params=pltpu.CompilerParams(
            dimension_semantics=("parallel", "parallel", "parallel"),
            vmem_limit_bytes=_vmem_limit()),
    )(qkv, qkv, qkv, mask_bias)


# ---------------------------------------------------------------------------
# BERT forward (glue: embedding gathers, parameter bookkeeping)
# ---------------------------------------------------------------------------

def encoder_layer(x, mask_bias, p, B, S, H, nh, dh):
    # Fused QKV projection: one kernel, x DMA'd from HBM once.
    qkv = linear(x, p["qkv_w"], p["qkv_b"])                     # [B*S, 3H]
    # Attention consumes the slab directly -- no XLA reshape/transpose glue.
    ctx = attention_qkv(qkv, mask_bias, B, S, H, nh, dh)        # [B*S, H]
    # Attention output projection + residual + LayerNorm fused in one kernel.
    x = linear_residual_layernorm(ctx, p["ao_w"], p["ao_b"], x,
                                  p["a_ln_g"], p["a_ln_b"])
    # FFN: GELU intermediate, then output projection + residual + LayerNorm fused.
    h = linear(x, p["fi_w"], p["fi_b"], activation="gelu")
    x = linear_residual_layernorm(h, p["fo_w"], p["fo_b"], x,
                                  p["f_ln_g"], p["f_ln_b"])
    return x


def bert_forward(params, cfg, ctx_ids, attn_mask):
    B, S = ctx_ids.shape
    H, nh = cfg["hidden"], cfg["num_heads"]
    dh = H // nh

    # Embeddings: word + position + token_type(0), then LayerNorm (gather is glue).
    # TODO(synk): only token_type 0 is applied (single-segment inputs).
    we = jnp.take(params["word_emb"], ctx_ids, axis=0)                       # [B,S,H] bf16
    pe = jnp.broadcast_to(params["pos_emb"][:S][None], (B, S, H))
    te = jnp.broadcast_to(params["type_emb"][0][None, None], (B, S, H))
    x = add_layernorm((we + pe).reshape(B * S, H), te.reshape(B * S, H),
                      params["emb_ln_g"], params["emb_ln_b"])

    # Extended attention mask: (1 - mask) * -10000, broadcast over query rows.
    mask_bias = ((1.0 - attn_mask.astype(jnp.float32)) * -10000.0)[:, None, :]  # [B,1,S]

    for p in params["layers"]:
        x = encoder_layer(x, mask_bias, p, B, S, H, nh, dh)

    # Pooler + classifier: degenerate shapes ([B,H] -> [B,2]) stay in plain XLA.
    cls = x.reshape(B, S, H)[:, 0, :].astype(jnp.float32)                    # [B, H]
    pooled = jnp.tanh(cls @ params["pool_w"].astype(jnp.float32) + params["pool_b"])
    logits = pooled @ params["fc_w"].astype(jnp.float32) + params["fc_b"]
    return logits


# ---------------------------------------------------------------------------
# Deterministic synthetic parameters (shapes follow BertModel + fc)
# bf16 weights/embeddings (f32 accumulation in-kernel), f32 biases / LN params.
# ---------------------------------------------------------------------------

def init_params(key, cfg):
    H, I = cfg["hidden"], cfg["intermediate"]
    V, P, C = cfg["vocab"], cfg["max_pos"], cfg["num_classes"]
    n_keys = 5 + 4 * cfg["num_layers"]
    keys = iter(jax.random.split(key, n_keys))

    def w(shape):
        return (0.02 * jax.random.normal(next(keys), shape, jnp.float32)).astype(jnp.bfloat16)

    zeros = lambda s: jnp.zeros(s, jnp.float32)
    ones = lambda s: jnp.ones(s, jnp.float32)

    params = {
        "word_emb": w((V, H)),
        "pos_emb": w((P, H)),
        "type_emb": w((2, H)),
        "emb_ln_g": ones((1, H)),
        "emb_ln_b": zeros((1, H)),
        "layers": [],
        "pool_w": w((H, H)),
        "pool_b": zeros((H,)),
        "fc_w": w((H, C)),
        "fc_b": zeros((C,)),
    }
    for _ in range(cfg["num_layers"]):
        params["layers"].append({
            # Q/K/V projections pre-concatenated along the output dim: [H, 3H].
            "qkv_w": w((H, 3 * H)), "qkv_b": zeros((3 * H,)),
            "ao_w": w((H, H)), "ao_b": zeros((H,)),
            "a_ln_g": ones((1, H)), "a_ln_b": zeros((1, H)),
            "fi_w": w((H, I)), "fi_b": zeros((I,)),
            "fo_w": w((I, H)), "fo_b": zeros((H,)),
            "f_ln_g": ones((1, H)), "f_ln_b": zeros((1, H)),
        })
    return params


if __name__ == "__main__":
    # Small BERT-like config: hidden=128 (one 128-lane vreg, so the qkv-slab
    # attention path is exercised with lane-aligned head blocks), 2 heads of
    # dh=64 (as in BERT-base), 2 layers, intermediate=512, seq=8, batch=2.
    cfg = dict(vocab=128, max_pos=32, hidden=128, num_heads=2,
               intermediate=512, num_layers=2, num_classes=2)
    B, S = 2, 8

    key = jax.random.PRNGKey(0)
    k_param, k_tok = jax.random.split(key)
    params = init_params(k_param, cfg)

    ctx_ids = jax.random.randint(k_tok, (B, S), 0, cfg["vocab"], dtype=jnp.int32)
    attn_mask = jnp.ones((B, S), jnp.float32).at[1, 5:].set(0.0)  # pad last 3 of sample 1

    fwd = jax.jit(functools.partial(bert_forward, params, cfg))
    logits = fwd(ctx_ids, attn_mask)
    jax.block_until_ready(logits)
    assert logits.shape == (B, cfg["num_classes"]), logits.shape
    assert bool(jnp.all(jnp.isfinite(logits)))
    print("KERNEL_OK")
</pallas_src>

<mosaic_0001>
module attributes {stable_mosaic.version = 11 : i64} {
  func.func @_mm_bias_act_kernel(%arg0: i32, %arg1: i32, %arg2: i32, %arg3: memref<16x128xbf16, #tpu.memory_space<vmem>>, %arg4: memref<128x128xbf16, #tpu.memory_space<vmem>>, %arg5: memref<1x128xf32, #tpu.memory_space<vmem>>, %arg6: memref<16x128xbf16, #tpu.memory_space<vmem>>, %arg7: memref<16x128xf32, #tpu.memory_space<vmem>>) attributes {dimension_semantics = [#tpu.dimension_semantics<parallel>, #tpu.dimension_semantics<parallel>, #tpu.dimension_semantics<arbitrary>], iteration_bounds = array<i64: 1, 3, 1>, scalar_prefetch = 0 : i64, scratch_operands = 1 : i64, tpu.core_type = #tpu.core_type<tc>, window_params = [{transform_indices = @transform_0, window_bounds = array<i64: 16, 128>}, {transform_indices = @transform_1, window_bounds = array<i64: 128, 128>}, {transform_indices = @transform_2, window_bounds = array<i64: 1, 128>}, {transform_indices = @transform_3, window_bounds = array<i64: 16, 128>}]} {
    %c0_i32 = arith.constant 0 : i32
    %0 = arith.cmpi eq, %arg2, %c0_i32 : i32
    %1 = arith.extui %0 : i1 to i32
    %c0_i32_0 = arith.constant 0 : i32
    %2 = arith.cmpi ne, %1, %c0_i32_0 : i32
    scf.if %2 {
      %c0_10 = arith.constant 0 : index
      %c0_11 = arith.constant 0 : index
      %12 = vector.load %arg5[%c0_10, %c0_11] : memref<1x128xf32, #tpu.memory_space<vmem>>, vector<1x128xf32>
      %13 = vector.shape_cast %12 : vector<1x128xf32> to vector<1x128xf32>
      %14 = vector.broadcast %13 : vector<1x128xf32> to vector<16x128xf32>
      %c0_12 = arith.constant 0 : index
      %c0_13 = arith.constant 0 : index
      %15 = vector.load %arg7[%c0_12, %c0_13] : memref<16x128xf32, #tpu.memory_space<vmem>>, vector<16x128xf32>
      tpu.vector_store %arg7[%c0_12, %c0_13], %14 {strides = array<i32>} : memref<16x128xf32, #tpu.memory_space<vmem>>, vector<16x128xf32>,
    } else {
    }
    %c0 = arith.constant 0 : index
    %c0_1 = arith.constant 0 : index
    %3 = vector.load %arg7[%c0, %c0_1] : memref<16x128xf32, #tpu.memory_space<vmem>>, vector<16x128xf32>
    %c0_2 = arith.constant 0 : index
    %c0_3 = arith.constant 0 : index
    %4 = vector.load %arg3[%c0_2, %c0_3] : memref<16x128xbf16, #tpu.memory_space<vmem>>, vector<16x128xbf16>
    %c0_4 = arith.constant 0 : index
    %c0_5 = arith.constant 0 : index
    %5 = vector.load %arg4[%c0_4, %c0_5] : memref<128x128xbf16, #tpu.memory_space<vmem>>, vector<128x128xbf16>
    %cst = arith.constant dense<0.000000e+00> : vector<16x128xf32>
    %6 = tpu.matmul %4, %5, %cst {dimension_numbers = #tpu.dot_dimension_numbers<[1], [0], [0], [1], [0, 0, 1, 1], [], []>} : vector<16x128xbf16>, vector<128x128xbf16>, vector<16x128xf32> -> vector<16x128xf32>
    %7 = arith.addf %3, %6 : vector<16x128xf32>
    %c0_6 = arith.constant 0 : index
    %c0_7 = arith.constant 0 : index
    %8 = vector.load %arg7[%c0_6, %c0_7] : memref<16x128xf32, #tpu.memory_space<vmem>>, vector<16x128xf32>
    tpu.vector_store %arg7[%c0_6, %c0_7], %7 {strides = array<i32>} : memref<16x128xf32, #tpu.memory_space<vmem>>, vector<16x128xf32>,
    %c0_i32_8 = arith.constant 0 : i32
    %9 = arith.cmpi eq, %arg2, %c0_i32_8 : i32
    %10 = arith.extui %9 : i1 to i32
    %c0_i32_9 = arith.constant 0 : i32
    %11 = arith.cmpi ne, %10, %c0_i32_9 : i32
    scf.if %11 {
      %c0_10 = arith.constant 0 : index
      %c0_11 = arith.constant 0 : index
      %12 = vector.load %arg7[%c0_10, %c0_11] : memref<16x128xf32, #tpu.memory_space<vmem>>, vector<16x128xf32>
      %13 = arith.truncf %12 : vector<16x128xf32> to vector<16x128xbf16>
      %c0_12 = arith.constant 0 : index
      %c0_13 = arith.constant 0 : index
      %14 = vector.load %arg6[%c0_12, %c0_13] : memref<16x128xbf16, #tpu.memory_space<vmem>>, vector<16x128xbf16>
      tpu.vector_store %arg6[%c0_12, %c0_13], %13 {strides = array<i32>} : memref<16x128xbf16, #tpu.memory_space<vmem>>, vector<16x128xbf16>,
    } else {
    }
    return
  }
  func.func @transform_0(%arg0: i32, %arg1: i32, %arg2: i32) -> (i32, i32) {
    %c0_i32 = arith.constant 0 : i32
    return %arg0, %arg2 : i32, i32
  }
  func.func @transform_1(%arg0: i32, %arg1: i32, %arg2: i32) -> (i32, i32) {
    %c0_i32 = arith.constant 0 : i32
    return %arg2, %arg1 : i32, i32
  }
  func.func @transform_2(%arg0: i32, %arg1: i32, %arg2: i32) -> (i32, i32) {
    %c0_i32 = arith.constant 0 : i32
    %c0_i32_0 = arith.constant 0 : i32
    return %c0_i32, %arg1 : i32, i32
  }
  func.func @transform_3(%arg0: i32, %arg1: i32, %arg2: i32) -> (i32, i32) {
    %c0_i32 = arith.constant 0 : i32
    return %arg0, %arg1 : i32, i32
  }
}

module attributes {stable_mosaic.version = 11 : i64} {
  func.func @_add_ln_kernel(%arg0: i32, %arg1: memref<16x128xbf16, #tpu.memory_space<vmem>>, %arg2: memref<16x128xbf16, #tpu.memory_space<vmem>>, %arg3: memref<1x128xf32, #tpu.memory_space<vmem>>, %arg4: memref<1x128xf32, #tpu.memory_space<vmem>>, %arg5: memref<16x128xbf16, #tpu.memory_space<vmem>>) attributes {dimension_semantics = [#tpu.dimension_semantics<parallel>], iteration_bounds = array<i64: 1>, scalar_prefetch = 0 : i64, scratch_operands = 0 : i64, tpu.core_type = #tpu.core_type<tc>, window_params = [{transform_indices = @transform_0, window_bounds = array<i64: 16, 128>}, {transform_indices = @transform_1, window_bounds = array<i64: 16, 128>}, {pipeline_mode = #tpu.pipeline_mode<synchronous>, transform_indices = @transform_2, window_bounds = array<i64: 1, 128>}, {pipeline_mode = #tpu.pipeline_mode<synchronous>, transform_indices = @transform_3, window_bounds = array<i64: 1, 128>}, {transform_indices = @transform_4, window_bounds = array<i64: 16, 128>}]} {
    %c0 = arith.constant 0 : index
    %c0_0 = arith.constant 0 : index
    %0 = vector.load %arg1[%c0, %c0_0] : memref<16x128xbf16, #tpu.memory_space<vmem>>, vector<16x128xbf16>
    %1 = arith.extf %0 : vector<16x128xbf16> to vector<16x128xf32>
    %c0_1 = arith.constant 0 : index
    %c0_2 = arith.constant 0 : index
    %2 = vector.load %arg2[%c0_1, %c0_2] : memref<16x128xbf16, #tpu.memory_space<vmem>>, vector<16x128xbf16>
    %3 = arith.extf %2 : vector<16x128xbf16> to vector<16x128xf32>
    %4 = arith.addf %1, %3 : vector<16x128xf32>
    %cst = arith.constant dense<0.000000e+00> : vector<16xf32>
    %5 = vector.multi_reduction <add>, %4, %cst [1] : vector<16x128xf32> to vector<16xf32>
    %6 = vector.shape_cast %5 : vector<16xf32> to vector<16x1xf32>
    %cst_3 = arith.constant 1.280000e+02 : f32
    %7 = vector.broadcast %cst_3 : f32 to vector<16x1xf32>
    %8 = arith.divf %6, %7 : vector<16x1xf32>
    %9 = vector.broadcast %8 : vector<16x1xf32> to vector<16x128xf32>
    %10 = arith.subf %4, %9 : vector<16x128xf32>
    %11 = arith.mulf %10, %10 : vector<16x128xf32>
    %cst_4 = arith.constant dense<0.000000e+00> : vector<16xf32>
    %12 = vector.multi_reduction <add>, %11, %cst_4 [1] : vector<16x128xf32> to vector<16xf32>
    %13 = vector.shape_cast %12 : vector<16xf32> to vector<16x1xf32>
    %cst_5 = arith.constant 1.280000e+02 : f32
    %14 = vector.broadcast %cst_5 : f32 to vector<16x1xf32>
    %15 = arith.divf %13, %14 : vector<16x1xf32>
    %cst_6 = arith.constant 9.99999996E-13 : f32
    %16 = vector.broadcast %cst_6 : f32 to vector<16x1xf32>
    %17 = arith.addf %15, %16 : vector<16x1xf32>
    %18 = math.rsqrt %17 : vector<16x1xf32>
    %19 = vector.broadcast %18 : vector<16x1xf32> to vector<16x128xf32>
    %20 = arith.mulf %10, %19 : vector<16x128xf32>
    %c0_7 = arith.constant 0 : index
    %c0_8 = arith.constant 0 : index
    %21 = vector.load %arg3[%c0_7, %c0_8] : memref<1x128xf32, #tpu.memory_space<vmem>>, vector<1x128xf32>
    %22 = vector.broadcast %21 : vector<1x128xf32> to vector<16x128xf32>
    %23 = arith.mulf %20, %22 : vector<16x128xf32>
    %c0_9 = arith.constant 0 : index
    %c0_10 = arith.constant 0 : index
    %24 = vector.load %arg4[%c0_9, %c0_10] : memref<1x128xf32, #tpu.memory_space<vmem>>, vector<1x128xf32>
    %25 = vector.broadcast %24 : vector<1x128xf32> to vector<16x128xf32>
    %26 = arith.addf %23, %25 : vector<16x128xf32>
    %27 = arith.truncf %26 : vector<16x128xf32> to vector<16x128xbf16>
    %c0_11 = arith.constant 0 : index
    %c0_12 = arith.constant 0 : index
    %28 = vector.load %arg5[%c0_11, %c0_12] : memref<16x128xbf16, #tpu.memory_space<vmem>>, vector<16x128xbf16>
    tpu.vector_store %arg5[%c0_11, %c0_12], %27 {strides = array<i32>} : memref<16x128xbf16, #tpu.memory_space<vmem>>, vector<16x128xbf16>,
    return
  }
  func.func @transform_0(%arg0: i32) -> (i32, i32) {
    %c0_i32 = arith.constant 0 : i32
    %c0_i32_0 = arith.constant 0 : i32
    return %arg0, %c0_i32 : i32, i32
  }
  func.func @transform_1(%arg0: i32) -> (i32, i32) {
    %c0_i32 = arith.constant 0 : i32
    %c0_i32_0 = arith.constant 0 : i32
    return %arg0, %c0_i32 : i32, i32
  }
  func.func @transform_2(%arg0: i32) -> (i32, i32) {
    %c0_i32 = arith.constant 0 : i32
    %c0_i32_0 = arith.constant 0 : i32
    %c0_i32_1 = arith.constant 0 : i32
    return %c0_i32, %c0_i32_0 : i32, i32
  }
  func.func @transform_3(%arg0: i32) -> (i32, i32) {
    %c0_i32 = arith.constant 0 : i32
    %c0_i32_0 = arith.constant 0 : i32
    %c0_i32_1 = arith.constant 0 : i32
    return %c0_i32, %c0_i32_0 : i32, i32
  }
  func.func @transform_4(%arg0: i32) -> (i32, i32) {
    %c0_i32 = arith.constant 0 : i32
    %c0_i32_0 = arith.constant 0 : i32
    return %arg0, %c0_i32 : i32, i32
  }
}

module attributes {stable_mosaic.version = 11 : i64} {
  func.func @_attention_kernel(%arg0: i32, %arg1: i32, %arg2: i32, %arg3: memref<8x128xbf16, #tpu.memory_space<vmem>>, %arg4: memref<8x128xbf16, #tpu.memory_space<vmem>>, %arg5: memref<8x128xbf16, #tpu.memory_space<vmem>>, %arg6: memref<1x1x8xf32, #tpu.memory_space<vmem>>, %arg7: memref<8x128xbf16, #tpu.memory_space<vmem>>) attributes {dimension_semantics = [#tpu.dimension_semantics<parallel>, #tpu.dimension_semantics<parallel>, #tpu.dimension_semantics<parallel>], iteration_bounds = array<i64: 2, 1, 1>, scalar_prefetch = 0 : i64, scratch_operands = 0 : i64, tpu.core_type = #tpu.core_type<tc>, window_params = [{transform_indices = @transform_0, window_bounds = array<i64: 8, 128>}, {transform_indices = @transform_1, window_bounds = array<i64: 8, 128>}, {transform_indices = @transform_2, window_bounds = array<i64: 8, 128>}, {transform_indices = @transform_3, window_bounds = array<i64: 1, 1, 8>}, {transform_indices = @transform_4, window_bounds = array<i64: 8, 128>}]} {
    %c0 = arith.constant 0 : index
    %c0_0 = arith.constant 0 : index
    %c0_1 = arith.constant 0 : index
    %0 = vector.load %arg6[%c0, %c0_0, %c0_1] : memref<1x1x8xf32, #tpu.memory_space<vmem>>, vector<1x1x8xf32>
    %1 = vector.shape_cast %0 : vector<1x1x8xf32> to vector<1x8xf32>
    %c0_2 = arith.constant 0 : index
    %c0_3 = arith.constant 0 : index
    %2 = vector.load %arg3[%c0_2, %c0_3] : memref<8x128xbf16, #tpu.memory_space<vmem>>, vector<8x64xbf16>
    %c0_4 = arith.constant 0 : index
    %c0_5 = arith.constant 0 : index
    %3 = vector.load %arg4[%c0_4, %c0_5] : memref<8x128xbf16, #tpu.memory_space<vmem>>, vector<8x64xbf16>
    %c0_6 = arith.constant 0 : index
    %c0_7 = arith.constant 0 : index
    %4 = vector.load %arg5[%c0_6, %c0_7] : memref<8x128xbf16, #tpu.memory_space<vmem>>, vector<8x64xbf16>
    %cst = arith.constant dense<0.000000e+00> : vector<8x8xf32>
    %5 = tpu.matmul %2, %3, %cst {dimension_numbers = #tpu.dot_dimension_numbers<[1], [1], [0], [0], [0, 0, 1, 0], [], []>} : vector<8x64xbf16>, vector<8x64xbf16>, vector<8x8xf32> -> vector<8x8xf32>
    %cst_8 = arith.constant 1.250000e-01 : f32
    %6 = vector.broadcast %cst_8 : f32 to vector<8x8xf32>
    %7 = arith.mulf %5, %6 : vector<8x8xf32>
    %8 = vector.broadcast %1 : vector<1x8xf32> to vector<8x8xf32>
    %9 = arith.addf %7, %8 : vector<8x8xf32>
    %cst_9 = arith.constant dense<0xFF800000> : vector<8xf32>
    %10 = vector.multi_reduction <maximumf>, %9, %cst_9 [1] : vector<8x8xf32> to vector<8xf32>
    %11 = vector.shape_cast %10 : vector<8xf32> to vector<8x1xf32>
    %12 = vector.broadcast %11 : vector<8x1xf32> to vector<8x8xf32>
    %13 = arith.subf %9, %12 : vector<8x8xf32>
    %14 = math.exp %13 : vector<8x8xf32>
    %cst_10 = arith.constant dense<0.000000e+00> : vector<8xf32>
    %15 = vector.multi_reduction <add>, %14, %cst_10 [1] : vector<8x8xf32> to vector<8xf32>
    %16 = vector.shape_cast %15 : vector<8xf32> to vector<8x1xf32>
    %17 = vector.broadcast %16 : vector<8x1xf32> to vector<8x8xf32>
    %18 = arith.divf %14, %17 : vector<8x8xf32>
    %19 = arith.truncf %18 : vector<8x8xf32> to vector<8x8xbf16>
    %cst_11 = arith.constant dense<0.000000e+00> : vector<8x64xf32>
    %20 = tpu.matmul %19, %4, %cst_11 {dimension_numbers = #tpu.dot_dimension_numbers<[1], [0], [0], [1], [0, 0, 1, 1], [], []>} : vector<8x8xbf16>, vector<8x64xbf16>, vector<8x64xf32> -> vector<8x64xf32>
    %21 = arith.truncf %20 : vector<8x64xf32> to vector<8x64xbf16>
    %c0_12 = arith.constant 0 : index
    %c0_13 = arith.constant 0 : index
    %22 = vector.load %arg7[%c0_12, %c0_13] : memref<8x128xbf16, #tpu.memory_space<vmem>>, vector<8x64xbf16>
    tpu.vector_store %arg7[%c0_12, %c0_13], %21 {strides = array<i32>} : memref<8x128xbf16, #tpu.memory_space<vmem>>, vector<8x64xbf16>,
    %c0_14 = arith.constant 0 : index
    %c64 = arith.constant 64 : index
    %23 = vector.load %arg3[%c0_14, %c64] : memref<8x128xbf16, #tpu.memory_space<vmem>>, vector<8x64xbf16>
    %c0_15 = arith.constant 0 : index
    %c64_16 = arith.constant 64 : index
    %24 = vector.load %arg4[%c0_15, %c64_16] : memref<8x128xbf16, #tpu.memory_space<vmem>>, vector<8x64xbf16>
    %c0_17 = arith.constant 0 : index
    %c64_18 = arith.constant 64 : index
    %25 = vector.load %arg5[%c0_17, %c64_18] : memref<8x128xbf16, #tpu.memory_space<vmem>>, vector<8x64xbf16>
    %cst_19 = arith.constant dense<0.000000e+00> : vector<8x8xf32>
    %26 = tpu.matmul %23, %24, %cst_19 {dimension_numbers = #tpu.dot_dimension_numbers<[1], [1], [0], [0], [0, 0, 1, 0], [], []>} : vector<8x64xbf16>, vector<8x64xbf16>, vector<8x8xf32> -> vector<8x8xf32>
    %cst_20 = arith.constant 1.250000e-01 : f32
    %27 = vector.broadcast %cst_20 : f32 to vector<8x8xf32>
    %28 = arith.mulf %26, %27 : vector<8x8xf32>
    %29 = vector.broadcast %1 : vector<1x8xf32> to vector<8x8xf32>
    %30 = arith.addf %28, %29 : vector<8x8xf32>
    %cst_21 = arith.constant dense<0xFF800000> : vector<8xf32>
    %31 = vector.multi_reduction <maximumf>, %30, %cst_21 [1] : vector<8x8xf32> to vector<8xf32>
    %32 = vector.shape_cast %31 : vector<8xf32> to vector<8x1xf32>
    %33 = vector.broadcast %32 : vector<8x1xf32> to vector<8x8xf32>
    %34 = arith.subf %30, %33 : vector<8x8xf32>
    %35 = math.exp %34 : vector<8x8xf32>
    %cst_22 = arith.constant dense<0.000000e+00> : vector<8xf32>
    %36 = vector.multi_reduction <add>, %35, %cst_22 [1] : vector<8x8xf32> to vector<8xf32>
    %37 = vector.shape_cast %36 : vector<8xf32> to vector<8x1xf32>
    %38 = vector.broadcast %37 : vector<8x1xf32> to vector<8x8xf32>
    %39 = arith.divf %35, %38 : vector<8x8xf32>
    %40 = arith.truncf %39 : vector<8x8xf32> to vector<8x8xbf16>
    %cst_23 = arith.constant dense<0.000000e+00> : vector<8x64xf32>
    %41 = tpu.matmul %40, %25, %cst_23 {dimension_numbers = #tpu.dot_dimension_numbers<[1], [0], [0], [1], [0, 0, 1, 1], [], []>} : vector<8x8xbf16>, vector<8x64xbf16>, vector<8x64xf32> -> vector<8x64xf32>
    %42 = arith.truncf %41 : vector<8x64xf32> to vector<8x64xbf16>
    %c0_24 = arith.constant 0 : index
    %c64_25 = arith.constant 64 : index
    %43 = vector.load %arg7[%c0_24, %c64_25] : memref<8x128xbf16, #tpu.memory_space<vmem>>, vector<8x64xbf16>
    tpu.vector_store %arg7[%c0_24, %c64_25], %42 {strides = array<i32>} : memref<8x128xbf16, #tpu.memory_space<vmem>>, vector<8x64xbf16>,
    return
  }
  func.func @transform_0(%arg0: i32, %arg1: i32, %arg2: i32) -> (i32, i32) {
    %c1_i32 = arith.constant 1 : i32
    %0 = arith.muli %arg0, %c1_i32 : i32
    %1 = arith.addi %0, %arg2 : i32
    %c0_i32 = arith.constant 0 : i32
    return %1, %arg1 : i32, i32
  }
  func.func @transform_1(%arg0: i32, %arg1: i32, %arg2: i32) -> (i32, i32) {
    %c1_i32 = arith.constant 1 : i32
    %0 = arith.addi %c1_i32, %arg1 : i32
    %c0_i32 = arith.constant 0 : i32
    return %arg0, %0 : i32, i32
  }
  func.func @transform_2(%arg0: i32, %arg1: i32, %arg2: i32) -> (i32, i32) {
    %c2_i32 = arith.constant 2 : i32
    %0 = arith.addi %c2_i32, %arg1 : i32
    %c0_i32 = arith.constant 0 : i32
    return %arg0, %0 : i32, i32
  }
  func.func @transform_3(%arg0: i32, %arg1: i32, %arg2: i32) -> (i32, i32, i32) {
    %c0_i32 = arith.constant 0 : i32
    %c0_i32_0 = arith.constant 0 : i32
    %c0_i32_1 = arith.constant 0 : i32
    return %arg0, %c0_i32, %c0_i32_0 : i32, i32, i32
  }
  func.func @transform_4(%arg0: i32, %arg1: i32, %arg2: i32) -> (i32, i32) {
    %c1_i32 = arith.constant 1 : i32
    %0 = arith.muli %arg0, %c1_i32 : i32
    %1 = arith.addi %0, %arg2 : i32
    %c0_i32 = arith.constant 0 : i32
    return %1, %arg1 : i32, i32
  }
}

module attributes {stable_mosaic.version = 11 : i64} {
  func.func @_mm_bias_res_ln_kernel(%arg0: i32, %arg1: i32, %arg2: memref<16x128xbf16, #tpu.memory_space<vmem>>, %arg3: memref<128x128xbf16, #tpu.memory_space<vmem>>, %arg4: memref<1x128xf32, #tpu.memory_space<vmem>>, %arg5: memref<16x128xbf16, #tpu.memory_space<vmem>>, %arg6: memref<1x128xf32, #tpu.memory_space<vmem>>, %arg7: memref<1x128xf32, #tpu.memory_space<vmem>>, %arg8: memref<16x128xbf16, #tpu.memory_space<vmem>>, %arg9: memref<16x128xf32, #tpu.memory_space<vmem>>) attributes {dimension_semantics = [#tpu.dimension_semantics<parallel>, #tpu.dimension_semantics<arbitrary>], iteration_bounds = array<i64: 1, 1>, scalar_prefetch = 0 : i64, scratch_operands = 1 : i64, tpu.core_type = #tpu.core_type<tc>, window_params = [{transform_indices = @transform_0, window_bounds = array<i64: 16, 128>}, {transform_indices = @transform_1, window_bounds = array<i64: 128, 128>}, {pipeline_mode = #tpu.pipeline_mode<synchronous>, transform_indices = @transform_2, window_bounds = array<i64: 1, 128>}, {transform_indices = @transform_3, window_bounds = array<i64: 16, 128>}, {pipeline_mode = #tpu.pipeline_mode<synchronous>, transform_indices = @transform_4, window_bounds = array<i64: 1, 128>}, {pipeline_mode = #tpu.pipeline_mode<synchronous>, transform_indices = @transform_5, window_bounds = array<i64: 1, 128>}, {transform_indices = @transform_6, window_bounds = array<i64: 16, 128>}]} {
    %c0_i32 = arith.constant 0 : i32
    %0 = arith.cmpi eq, %arg1, %c0_i32 : i32
    %1 = arith.extui %0 : i1 to i32
    %c0_i32_0 = arith.constant 0 : i32
    %2 = arith.cmpi ne, %1, %c0_i32_0 : i32
    scf.if %2 {
      %c0_10 = arith.constant 0 : index
      %c0_11 = arith.constant 0 : index
      %12 = vector.load %arg4[%c0_10, %c0_11] : memref<1x128xf32, #tpu.memory_space<vmem>>, vector<1x128xf32>
      %13 = vector.shape_cast %12 : vector<1x128xf32> to vector<1x128xf32>
      %14 = vector.broadcast %13 : vector<1x128xf32> to vector<16x128xf32>
      %c0_12 = arith.constant 0 : index
      %c0_13 = arith.constant 0 : index
      %15 = vector.load %arg5[%c0_12, %c0_13] : memref<16x128xbf16, #tpu.memory_space<vmem>>, vector<16x128xbf16>
      %16 = arith.extf %15 : vector<16x128xbf16> to vector<16x128xf32>
      %17 = arith.addf %14, %16 : vector<16x128xf32>
      %c0_14 = arith.constant 0 : index
      %c0_15 = arith.constant 0 : index
      %18 = vector.load %arg9[%c0_14, %c0_15] : memref<16x128xf32, #tpu.memory_space<vmem>>, vector<16x128xf32>
      tpu.vector_store %arg9[%c0_14, %c0_15], %17 {strides = array<i32>} : memref<16x128xf32, #tpu.memory_space<vmem>>, vector<16x128xf32>,
    } else {
    }
    %c0 = arith.constant 0 : index
    %c0_1 = arith.constant 0 : index
    %3 = vector.load %arg9[%c0, %c0_1] : memref<16x128xf32, #tpu.memory_space<vmem>>, vector<16x128xf32>
    %c0_2 = arith.constant 0 : index
    %c0_3 = arith.constant 0 : index
    %4 = vector.load %arg2[%c0_2, %c0_3] : memref<16x128xbf16, #tpu.memory_space<vmem>>, vector<16x128xbf16>
    %c0_4 = arith.constant 0 : index
    %c0_5 = arith.constant 0 : index
    %5 = vector.load %arg3[%c0_4, %c0_5] : memref<128x128xbf16, #tpu.memory_space<vmem>>, vector<128x128xbf16>
    %cst = arith.constant dense<0.000000e+00> : vector<16x128xf32>
    %6 = tpu.matmul %4, %5, %cst {dimension_numbers = #tpu.dot_dimension_numbers<[1], [0], [0], [1], [0, 0, 1, 1], [], []>} : vector<16x128xbf16>, vector<128x128xbf16>, vector<16x128xf32> -> vector<16x128xf32>
    %7 = arith.addf %3, %6 : vector<16x128xf32>
    %c0_6 = arith.constant 0 : index
    %c0_7 = arith.constant 0 : index
    %8 = vector.load %arg9[%c0_6, %c0_7] : memref<16x128xf32, #tpu.memory_space<vmem>>, vector<16x128xf32>
    tpu.vector_store %arg9[%c0_6, %c0_7], %7 {strides = array<i32>} : memref<16x128xf32, #tpu.memory_space<vmem>>, vector<16x128xf32>,
    %c0_i32_8 = arith.constant 0 : i32
    %9 = arith.cmpi eq, %arg1, %c0_i32_8 : i32
    %10 = arith.extui %9 : i1 to i32
    %c0_i32_9 = arith.constant 0 : i32
    %11 = arith.cmpi ne, %10, %c0_i32_9 : i32
    scf.if %11 {
      %c0_10 = arith.constant 0 : index
      %c0_11 = arith.constant 0 : index
      %12 = vector.load %arg9[%c0_10, %c0_11] : memref<16x128xf32, #tpu.memory_space<vmem>>, vector<16x128xf32>
      %cst_12 = arith.constant dense<0.000000e+00> : vector<16xf32>
      %13 = vector.multi_reduction <add>, %12, %cst_12 [1] : vector<16x128xf32> to vector<16xf32>
      %14 = vector.shape_cast %13 : vector<16xf32> to vector<16x1xf32>
      %cst_13 = arith.constant 1.280000e+02 : f32
      %15 = vector.broadcast %cst_13 : f32 to vector<16x1xf32>
      %16 = arith.divf %14, %15 : vector<16x1xf32>
      %17 = vector.broadcast %16 : vector<16x1xf32> to vector<16x128xf32>
      %18 = arith.subf %12, %17 : vector<16x128xf32>
      %19 = arith.mulf %18, %18 : vector<16x128xf32>
      %cst_14 = arith.constant dense<0.000000e+00> : vector<16xf32>
      %20 = vector.multi_reduction <add>, %19, %cst_14 [1] : vector<16x128xf32> to vector<16xf32>
      %21 = vector.shape_cast %20 : vector<16xf32> to vector<16x1xf32>
      %cst_15 = arith.constant 1.280000e+02 : f32
      %22 = vector.broadcast %cst_15 : f32 to vector<16x1xf32>
      %23 = arith.divf %21, %22 : vector<16x1xf32>
      %cst_16 = arith.constant 9.99999996E-13 : f32
      %24 = vector.broadcast %cst_16 : f32 to vector<16x1xf32>
      %25 = arith.addf %23, %24 : vector<16x1xf32>
      %26 = math.rsqrt %25 : vector<16x1xf32>
      %27 = vector.broadcast %26 : vector<16x1xf32> to vector<16x128xf32>
      %28 = arith.mulf %18, %27 : vector<16x128xf32>
      %c0_17 = arith.constant 0 : index
      %c0_18 = arith.constant 0 : index
      %29 = vector.load %arg6[%c0_17, %c0_18] : memref<1x128xf32, #tpu.memory_space<vmem>>, vector<1x128xf32>
      %30 = vector.broadcast %29 : vector<1x128xf32> to vector<16x128xf32>
      %31 = arith.mulf %28, %30 : vector<16x128xf32>
      %c0_19 = arith.constant 0 : index
      %c0_20 = arith.constant 0 : index
      %32 = vector.load %arg7[%c0_19, %c0_20] : memref<1x128xf32, #tpu.memory_space<vmem>>, vector<1x128xf32>
      %33 = vector.broadcast %32 : vector<1x128xf32> to vector<16x128xf32>
      %34 = arith.addf %31, %33 : vector<16x128xf32>
      %35 = arith.truncf %34 : vector<16x128xf32> to vector<16x128xbf16>
      %c0_21 = arith.constant 0 : index
      %c0_22 = arith.constant 0 : index
      %36 = vector.load %arg8[%c0_21, %c0_22] : memref<16x128xbf16, #tpu.memory_space<vmem>>, vector<16x128xbf16>
      tpu.vector_store %arg8[%c0_21, %c0_22], %35 {strides = array<i32>} : memref<16x128xbf16, #tpu.memory_space<vmem>>, vector<16x128xbf16>,
    } else {
    }
    return
  }
  func.func @transform_0(%arg0: i32, %arg1: i32) -> (i32, i32) {
    %c0_i32 = arith.constant 0 : i32
    return %arg0, %arg1 : i32, i32
  }
  func.func @transform_1(%arg0: i32, %arg1: i32) -> (i32, i32) {
    %c0_i32 = arith.constant 0 : i32
    %c0_i32_0 = arith.constant 0 : i32
    return %arg1, %c0_i32 : i32, i32
  }
  func.func @transform_2(%arg0: i32, %arg1: i32) -> (i32, i32) {
    %c0_i32 = arith.constant 0 : i32
    %c0_i32_0 = arith.constant 0 : i32
    %c0_i32_1 = arith.constant 0 : i32
    return %c0_i32, %c0_i32_0 : i32, i32
  }
  func.func @transform_3(%arg0: i32, %arg1: i32) -> (i32, i32) {
    %c0_i32 = arith.constant 0 : i32
    %c0_i32_0 = arith.constant 0 : i32
    return %arg0, %c0_i32 : i32, i32
  }
  func.func @transform_4(%arg0: i32, %arg1: i32) -> (i32, i32) {
    %c0_i32 = arith.constant 0 : i32
    %c0_i32_0 = arith.constant 0 : i32
    %c0_i32_1 = arith.constant 0 : i32
    return %c0_i32, %c0_i32_0 : i32, i32
  }
  func.func @transform_5(%arg0: i32, %arg1: i32) -> (i32, i32) {
    %c0_i32 = arith.constant 0 : i32
    %c0_i32_0 = arith.constant 0 : i32
    %c0_i32_1 = arith.constant 0 : i32
    return %c0_i32, %c0_i32_0 : i32, i32
  }
  func.func @transform_6(%arg0: i32, %arg1: i32) -> (i32, i32) {
    %c0_i32 = arith.constant 0 : i32
    %c0_i32_0 = arith.constant 0 : i32
    return %arg0, %c0_i32 : i32, i32
  }
}

module attributes {stable_mosaic.version = 11 : i64} {
  func.func @_mm_bias_res_ln_kernel(%arg0: i32, %arg1: i32, %arg2: memref<16x512xbf16, #tpu.memory_space<vmem>>, %arg3: memref<512x128xbf16, #tpu.memory_space<vmem>>, %arg4: memref<1x128xf32, #tpu.memory_space<vmem>>, %arg5: memref<16x128xbf16, #tpu.memory_space<vmem>>, %arg6: memref<1x128xf32, #tpu.memory_space<vmem>>, %arg7: memref<1x128xf32, #tpu.memory_space<vmem>>, %arg8: memref<16x128xbf16, #tpu.memory_space<vmem>>, %arg9: memref<16x128xf32, #tpu.memory_space<vmem>>) attributes {dimension_semantics = [#tpu.dimension_semantics<parallel>, #tpu.dimension_semantics<arbitrary>], iteration_bounds = array<i64: 1, 1>, scalar_prefetch = 0 : i64, scratch_operands = 1 : i64, tpu.core_type = #tpu.core_type<tc>, window_params = [{transform_indices = @transform_0, window_bounds = array<i64: 16, 512>}, {transform_indices = @transform_1, window_bounds = array<i64: 512, 128>}, {pipeline_mode = #tpu.pipeline_mode<synchronous>, transform_indices = @transform_2, window_bounds = array<i64: 1, 128>}, {transform_indices = @transform_3, window_bounds = array<i64: 16, 128>}, {pipeline_mode = #tpu.pipeline_mode<synchronous>, transform_indices = @transform_4, window_bounds = array<i64: 1, 128>}, {pipeline_mode = #tpu.pipeline_mode<synchronous>, transform_indices = @transform_5, window_bounds = array<i64: 1, 128>}, {transform_indices = @transform_6, window_bounds = array<i64: 16, 128>}]} {
    %c0_i32 = arith.constant 0 : i32
    %0 = arith.cmpi eq, %arg1, %c0_i32 : i32
    %1 = arith.extui %0 : i1 to i32
    %c0_i32_0 = arith.constant 0 : i32
    %2 = arith.cmpi ne, %1, %c0_i32_0 : i32
    scf.if %2 {
      %c0_10 = arith.constant 0 : index
      %c0_11 = arith.constant 0 : index
      %12 = vector.load %arg4[%c0_10, %c0_11] : memref<1x128xf32, #tpu.memory_space<vmem>>, vector<1x128xf32>
      %13 = vector.shape_cast %12 : vector<1x128xf32> to vector<1x128xf32>
      %14 = vector.broadcast %13 : vector<1x128xf32> to vector<16x128xf32>
      %c0_12 = arith.constant 0 : index
      %c0_13 = arith.constant 0 : index
      %15 = vector.load %arg5[%c0_12, %c0_13] : memref<16x128xbf16, #tpu.memory_space<vmem>>, vector<16x128xbf16>
      %16 = arith.extf %15 : vector<16x128xbf16> to vector<16x128xf32>
      %17 = arith.addf %14, %16 : vector<16x128xf32>
      %c0_14 = arith.constant 0 : index
      %c0_15 = arith.constant 0 : index
      %18 = vector.load %arg9[%c0_14, %c0_15] : memref<16x128xf32, #tpu.memory_space<vmem>>, vector<16x128xf32>
      tpu.vector_store %arg9[%c0_14, %c0_15], %17 {strides = array<i32>} : memref<16x128xf32, #tpu.memory_space<vmem>>, vector<16x128xf32>,
    } else {
    }
    %c0 = arith.constant 0 : index
    %c0_1 = arith.constant 0 : index
    %3 = vector.load %arg9[%c0, %c0_1] : memref<16x128xf32, #tpu.memory_space<vmem>>, vector<16x128xf32>
    %c0_2 = arith.constant 0 : index
    %c0_3 = arith.constant 0 : index
    %4 = vector.load %arg2[%c0_2, %c0_3] : memref<16x512xbf16, #tpu.memory_space<vmem>>, vector<16x512xbf16>
    %c0_4 = arith.constant 0 : index
    %c0_5 = arith.constant 0 : index
    %5 = vector.load %arg3[%c0_4, %c0_5] : memref<512x128xbf16, #tpu.memory_space<vmem>>, vector<512x128xbf16>
    %cst = arith.constant dense<0.000000e+00> : vector<16x128xf32>
    %6 = tpu.matmul %4, %5, %cst {dimension_numbers = #tpu.dot_dimension_numbers<[1], [0], [0], [1], [0, 0, 1, 1], [], []>} : vector<16x512xbf16>, vector<512x128xbf16>, vector<16x128xf32> -> vector<16x128xf32>
    %7 = arith.addf %3, %6 : vector<16x128xf32>
    %c0_6 = arith.constant 0 : index
    %c0_7 = arith.constant 0 : index
    %8 = vector.load %arg9[%c0_6, %c0_7] : memref<16x128xf32, #tpu.memory_space<vmem>>, vector<16x128xf32>
    tpu.vector_store %arg9[%c0_6, %c0_7], %7 {strides = array<i32>} : memref<16x128xf32, #tpu.memory_space<vmem>>, vector<16x128xf32>,
    %c0_i32_8 = arith.constant 0 : i32
    %9 = arith.cmpi eq, %arg1, %c0_i32_8 : i32
    %10 = arith.extui %9 : i1 to i32
    %c0_i32_9 = arith.constant 0 : i32
    %11 = arith.cmpi ne, %10, %c0_i32_9 : i32
    scf.if %11 {
      %c0_10 = arith.constant 0 : index
      %c0_11 = arith.constant 0 : index
      %12 = vector.load %arg9[%c0_10, %c0_11] : memref<16x128xf32, #tpu.memory_space<vmem>>, vector<16x128xf32>
      %cst_12 = arith.constant dense<0.000000e+00> : vector<16xf32>
      %13 = vector.multi_reduction <add>, %12, %cst_12 [1] : vector<16x128xf32> to vector<16xf32>
      %14 = vector.shape_cast %13 : vector<16xf32> to vector<16x1xf32>
      %cst_13 = arith.constant 1.280000e+02 : f32
      %15 = vector.broadcast %cst_13 : f32 to vector<16x1xf32>
      %16 = arith.divf %14, %15 : vector<16x1xf32>
      %17 = vector.broadcast %16 : vector<16x1xf32> to vector<16x128xf32>
      %18 = arith.subf %12, %17 : vector<16x128xf32>
      %19 = arith.mulf %18, %18 : vector<16x128xf32>
      %cst_14 = arith.constant dense<0.000000e+00> : vector<16xf32>
      %20 = vector.multi_reduction <add>, %19, %cst_14 [1] : vector<16x128xf32> to vector<16xf32>
      %21 = vector.shape_cast %20 : vector<16xf32> to vector<16x1xf32>
      %cst_15 = arith.constant 1.280000e+02 : f32
      %22 = vector.broadcast %cst_15 : f32 to vector<16x1xf32>
      %23 = arith.divf %21, %22 : vector<16x1xf32>
      %cst_16 = arith.constant 9.99999996E-13 : f32
      %24 = vector.broadcast %cst_16 : f32 to vector<16x1xf32>
      %25 = arith.addf %23, %24 : vector<16x1xf32>
      %26 = math.rsqrt %25 : vector<16x1xf32>
      %27 = vector.broadcast %26 : vector<16x1xf32> to vector<16x128xf32>
      %28 = arith.mulf %18, %27 : vector<16x128xf32>
      %c0_17 = arith.constant 0 : index
      %c0_18 = arith.constant 0 : index
      %29 = vector.load %arg6[%c0_17, %c0_18] : memref<1x128xf32, #tpu.memory_space<vmem>>, vector<1x128xf32>
      %30 = vector.broadcast %29 : vector<1x128xf32> to vector<16x128xf32>
      %31 = arith.mulf %28, %30 : vector<16x128xf32>
      %c0_19 = arith.constant 0 : index
      %c0_20 = arith.constant 0 : index
      %32 = vector.load %arg7[%c0_19, %c0_20] : memref<1x128xf32, #tpu.memory_space<vmem>>, vector<1x128xf32>
      %33 = vector.broadcast %32 : vector<1x128xf32> to vector<16x128xf32>
      %34 = arith.addf %31, %33 : vector<16x128xf32>
      %35 = arith.truncf %34 : vector<16x128xf32> to vector<16x128xbf16>
      %c0_21 = arith.constant 0 : index
      %c0_22 = arith.constant 0 : index
      %36 = vector.load %arg8[%c0_21, %c0_22] : memref<16x128xbf16, #tpu.memory_space<vmem>>, vector<16x128xbf16>
      tpu.vector_store %arg8[%c0_21, %c0_22], %35 {strides = array<i32>} : memref<16x128xbf16, #tpu.memory_space<vmem>>, vector<16x128xbf16>,
    } else {
    }
    return
  }
  func.func @transform_0(%arg0: i32, %arg1: i32) -> (i32, i32) {
    %c0_i32 = arith.constant 0 : i32
    return %arg0, %arg1 : i32, i32
  }
  func.func @transform_1(%arg0: i32, %arg1: i32) -> (i32, i32) {
    %c0_i32 = arith.constant 0 : i32
    %c0_i32_0 = arith.constant 0 : i32
    return %arg1, %c0_i32 : i32, i32
  }
  func.func @transform_2(%arg0: i32, %arg1: i32) -> (i32, i32) {
    %c0_i32 = arith.constant 0 : i32
    %c0_i32_0 = arith.constant 0 : i32
    %c0_i32_1 = arith.constant 0 : i32
    return %c0_i32, %c0_i32_0 : i32, i32
  }
  func.func @transform_3(%arg0: i32, %arg1: i32) -> (i32, i32) {
    %c0_i32 = arith.constant 0 : i32
    %c0_i32_0 = arith.constant 0 : i32
    return %arg0, %c0_i32 : i32, i32
  }
  func.func @transform_4(%arg0: i32, %arg1: i32) -> (i32, i32) {
    %c0_i32 = arith.constant 0 : i32
    %c0_i32_0 = arith.constant 0 : i32
    %c0_i32_1 = arith.constant 0 : i32
    return %c0_i32, %c0_i32_0 : i32, i32
  }
  func.func @transform_5(%arg0: i32, %arg1: i32) -> (i32, i32) {
    %c0_i32 = arith.constant 0 : i32
    %c0_i32_0 = arith.constant 0 : i32
    %c0_i32_1 = arith.constant 0 : i32
    return %c0_i32, %c0_i32_0 : i32, i32
  }
  func.func @transform_6(%arg0: i32, %arg1: i32) -> (i32, i32) {
    %c0_i32 = arith.constant 0 : i32
    %c0_i32_0 = arith.constant 0 : i32
    return %arg0, %c0_i32 : i32, i32
  }
}

module attributes {stable_mosaic.version = 11 : i64} {
  func.func @_mm_bias_act_kernel(%arg0: i32, %arg1: i32, %arg2: i32, %arg3: memref<16x128xbf16, #tpu.memory_space<vmem>>, %arg4: memref<128x512xbf16, #tpu.memory_space<vmem>>, %arg5: memref<1x512xf32, #tpu.memory_space<vmem>>, %arg6: memref<16x512xbf16, #tpu.memory_space<vmem>>, %arg7: memref<16x512xf32, #tpu.memory_space<vmem>>) attributes {dimension_semantics = [#tpu.dimension_semantics<parallel>, #tpu.dimension_semantics<parallel>, #tpu.dimension_semantics<arbitrary>], iteration_bounds = array<i64: 1, 1, 1>, scalar_prefetch = 0 : i64, scratch_operands = 1 : i64, tpu.core_type = #tpu.core_type<tc>, window_params = [{transform_indices = @transform_0, window_bounds = array<i64: 16, 128>}, {transform_indices = @transform_1, window_bounds = array<i64: 128, 512>}, {transform_indices = @transform_2, window_bounds = array<i64: 1, 512>}, {transform_indices = @transform_3, window_bounds = array<i64: 16, 512>}]} {
    %c0_i32 = arith.constant 0 : i32
    %0 = arith.cmpi eq, %arg2, %c0_i32 : i32
    %1 = arith.extui %0 : i1 to i32
    %c0_i32_0 = arith.constant 0 : i32
    %2 = arith.cmpi ne, %1, %c0_i32_0 : i32
    scf.if %2 {
      %c0_10 = arith.constant 0 : index
      %c0_11 = arith.constant 0 : index
      %12 = vector.load %arg5[%c0_10, %c0_11] : memref<1x512xf32, #tpu.memory_space<vmem>>, vector<1x512xf32>
      %13 = vector.shape_cast %12 : vector<1x512xf32> to vector<1x512xf32>
      %14 = vector.broadcast %13 : vector<1x512xf32> to vector<16x512xf32>
      %c0_12 = arith.constant 0 : index
      %c0_13 = arith.constant 0 : index
      %15 = vector.load %arg7[%c0_12, %c0_13] : memref<16x512xf32, #tpu.memory_space<vmem>>, vector<16x512xf32>
      tpu.vector_store %arg7[%c0_12, %c0_13], %14 {strides = array<i32>} : memref<16x512xf32, #tpu.memory_space<vmem>>, vector<16x512xf32>,
    } else {
    }
    %c0 = arith.constant 0 : index
    %c0_1 = arith.constant 0 : index
    %3 = vector.load %arg7[%c0, %c0_1] : memref<16x512xf32, #tpu.memory_space<vmem>>, vector<16x512xf32>
    %c0_2 = arith.constant 0 : index
    %c0_3 = arith.constant 0 : index
    %4 = vector.load %arg3[%c0_2, %c0_3] : memref<16x128xbf16, #tpu.memory_space<vmem>>, vector<16x128xbf16>
    %c0_4 = arith.constant 0 : index
    %c0_5 = arith.constant 0 : index
    %5 = vector.load %arg4[%c0_4, %c0_5] : memref<128x512xbf16, #tpu.memory_space<vmem>>, vector<128x512xbf16>
    %cst = arith.constant dense<0.000000e+00> : vector<16x512xf32>
    %6 = tpu.matmul %4, %5, %cst {dimension_numbers = #tpu.dot_dimension_numbers<[1], [0], [0], [1], [0, 0, 1, 1], [], []>} : vector<16x128xbf16>, vector<128x512xbf16>, vector<16x512xf32> -> vector<16x512xf32>
    %7 = arith.addf %3, %6 : vector<16x512xf32>
    %c0_6 = arith.constant 0 : index
    %c0_7 = arith.constant 0 : index
    %8 = vector.load %arg7[%c0_6, %c0_7] : memref<16x512xf32, #tpu.memory_space<vmem>>, vector<16x512xf32>
    tpu.vector_store %arg7[%c0_6, %c0_7], %7 {strides = array<i32>} : memref<16x512xf32, #tpu.memory_space<vmem>>, vector<16x512xf32>,
    %c0_i32_8 = arith.constant 0 : i32
    %9 = arith.cmpi eq, %arg2, %c0_i32_8 : i32
    %10 = arith.extui %9 : i1 to i32
    %c0_i32_9 = arith.constant 0 : i32
    %11 = arith.cmpi ne, %10, %c0_i32_9 : i32
    scf.if %11 {
      %c0_10 = arith.constant 0 : index
      %c0_11 = arith.constant 0 : index
      %12 = vector.load %arg7[%c0_10, %c0_11] : memref<16x512xf32, #tpu.memory_space<vmem>>, vector<16x512xf32>
      %cst_12 = arith.constant 5.000000e-01 : f32
      %13 = vector.broadcast %cst_12 : f32 to vector<16x512xf32>
      %14 = arith.mulf %13, %12 : vector<16x512xf32>
      %cst_13 = arith.constant 4.471500e-02 : f32
      %15 = vector.broadcast %cst_13 : f32 to vector<16x512xf32>
      %16 = arith.mulf %15, %12 : vector<16x512xf32>
      %17 = arith.mulf %16, %12 : vector<16x512xf32>
      %18 = arith.mulf %17, %12 : vector<16x512xf32>
      %19 = arith.addf %12, %18 : vector<16x512xf32>
      %cst_14 = arith.constant 0.797884583 : f32
      %20 = vector.broadcast %cst_14 : f32 to vector<16x512xf32>
      %21 = arith.mulf %20, %19 : vector<16x512xf32>
      %22 = math.tanh %21 : vector<16x512xf32>
      %cst_15 = arith.constant 1.000000e+00 : f32
      %23 = vector.broadcast %cst_15 : f32 to vector<16x512xf32>
      %24 = arith.addf %23, %22 : vector<16x512xf32>
      %25 = arith.mulf %14, %24 : vector<16x512xf32>
      %26 = arith.truncf %25 : vector<16x512xf32> to vector<16x512xbf16>
      %c0_16 = arith.constant 0 : index
      %c0_17 = arith.constant 0 : index
      %27 = vector.load %arg6[%c0_16, %c0_17] : memref<16x512xbf16, #tpu.memory_space<vmem>>, vector<16x512xbf16>
      tpu.vector_store %arg6[%c0_16, %c0_17], %26 {strides = array<i32>} : memref<16x512xbf16, #tpu.memory_space<vmem>>, vector<16x512xbf16>,
    } else {
    }
    return
  }
  func.func @transform_0(%arg0: i32, %arg1: i32, %arg2: i32) -> (i32, i32) {
    %c0_i32 = arith.constant 0 : i32
    return %arg0, %arg2 : i32, i32
  }
  func.func @transform_1(%arg0: i32, %arg1: i32, %arg2: i32) -> (i32, i32) {
    %c0_i32 = arith.constant 0 : i32
    return %arg2, %arg1 : i32, i32
  }
  func.func @transform_2(%arg0: i32, %arg1: i32, %arg2: i32) -> (i32, i32) {
    %c0_i32 = arith.constant 0 : i32
    %c0_i32_0 = arith.constant 0 : i32
    return %c0_i32, %arg1 : i32, i32
  }
  func.func @transform_3(%arg0: i32, %arg1: i32, %arg2: i32) -> (i32, i32) {
    %c0_i32 = arith.constant 0 : i32
    return %arg0, %arg1 : i32, i32
  }
}

</mosaic_0001>

<bundles_post_ra>
// kernel: bert_forward.12
= control target key start
LH: loop header
LB: loop body
LE: loop exit
PB: predicated region body
PF: predicated region fallthrough
CT: control target
= control target key end

     0   :  { %s818_s12 = smov 0   ;;  %s820_s13 = smov 0   ;;  %s920_s0 = inlined_call_operand.vmem [shape: bf16[16,128], index: 0, kind: input, shape index: {}]   ;;  %s921_s1 = inlined_call_operand.vmem [shape: bf16[128,384], index: 1, kind: input, shape index: {}]   ;;  %s922_s2 = inlined_call_operand.vmem [shape: f32[1,384], index: 2, kind: input, shape index: {}]   ;;  %s923_s3 = inlined_call_operand.vmem [shape: bf16[16,384], index: 3, kind: output, shape index: {}]  }
   0x1   :  { %s822_s14 = smov 0   ;;  %s824_s15 = smov 0  }
   0x2   :  { %s826_s16 = smov 0  }
   0x3 LB: > { %s28_s17 = sadd.s32 1, %s790_s15  ;;  %s643_s18 = sadd.s32 4294967295, %s794_s16   ;;  %s794_s16 = sphi %s826_s16, %s13_s16   ;;  %s790_s15 = sphi %s824_s15, %s928_s15   ;;  %s786_s14 = sphi %s822_s14, %s927_s14   ;;  %s782_s13 = sphi %s820_s13, %s926_s13   ;;  %s778_s12 = sphi %s818_s12, %s925_s12  }
   0x4   : > { %p30_p0 = scmp.ge.s32.totalorder %s28_s17, 3  ;;  %p76_p1 = scmp.ne.s32.totalorder %s782_s13, %s778_s12 }
   0x5   : > { %p77_p2 = scmp.eq.s32.totalorder %s794_s16, 0  ;;  %p134_p4 = scmp.eq.s32.totalorder %s643_s18, 2 }
   0x6   : > { %s930_s17 = smov (%p30_p0, %s28_s17), 0  ;;  %s69_s20 = sadd.s32 1, %s782_s13 }
   0x7   : > { %p78_p3 = por %p77_p2, %p76_p1  ;;  %s65_s19 = ssub.s32 %s790_s15, %s930_s17 }
   0x8   : > { %p67_p5 = scmp.eq.s32.totalorder %s65_s19, 0  ;;  %p853_p6 = por %p134_p4, %p76_p1 }
   0x9   : > { %p647_p7 = scmp.ge.s32.totalorder %s794_s16, 3 }
   0xa   : > { %s858_s22 = scalar_select %p67_p5, %s782_s13, %s69_s20  }
   0xb   : > { %168 = sbr.rel (%p647_p7) target bundleno = 32 (0x20), region = 20 }
  0x12   : > { %171 = sbr.rel (!%p78_p3) target bundleno = 32 (0x20), region = 24  ;;  %s173_s23 = sand.u32 (%p78_p3), 1, %s782_s13  }
  0x13   : > { %s649_s24 = sshll.u32 (%p78_p3), %s790_s15, 2  ;;  %s648_s25 = sshll.u32 (%p78_p3), %s173_s23, 6 }
  0x14   : > { %s866_s28 = scalar_lea.vmem (%p78_p3), %s921_s1, %s649_s24  ;;  %s175_s29 = scalar_lea.vmem (%p78_p3), [#allocation3], %s648_s25 }
  0x15   : > { %v196_v0 = vld [vmem:[%s866_s28] sm:$0xf] (%p78_p3)  ;;  %v198_v1 = vld [vmem:[%s866_s28 + $0xc] sm:$0xf] (%p78_p3)  ;;  %v200_v2 = vld [vmem:[%s866_s28 + $0x18] sm:$0xf] (%p78_p3) }
  0x16   : > { %197 = vst [vmem:[%s175_s29] sm:$0xf] (%p78_p3), %v196_v0  ;;  %199 = vst [vmem:[%s175_s29 + $0x4] sm:$0xf] (%p78_p3), %v198_v1  ;;  %v202_v3 = vld [vmem:[%s866_s28 + $0x24] sm:$0xf] (%p78_p3) }
  0x17   : > { %v204_v4 = vld [vmem:[%s866_s28 + $0x30] sm:$0xf] (%p78_p3)  ;;  %201 = vst [vmem:[%s175_s29 + $0x8] sm:$0xf] (%p78_p3), %v200_v2  ;;  %203 = vst [vmem:[%s175_s29 + $0xc] sm:$0xf] (%p78_p3), %v202_v3 }
  0x18   : > { %205 = vst [vmem:[%s175_s29 + $0x10] sm:$0xf] (%p78_p3), %v204_v4  ;;  %v206_v5 = vld [vmem:[%s866_s28 + $0x3c] sm:$0xf] (%p78_p3)  ;;  %v208_v6 = vld [vmem:[%s866_s28 + $0x48] sm:$0xf] (%p78_p3) }
  0x19   : > { %v210_v7 = vld [vmem:[%s866_s28 + $0x54] sm:$0xf]  ;;  %207 = vst [vmem:[%s175_s29 + $0x14] sm:$0xf] %v206_v5  ;;  %209 = vst [vmem:[%s175_s29 + $0x18] sm:$0xf] %v208_v6 }
  0x1a   : > { %211 = vst [vmem:[%s175_s29 + $0x1c] sm:$0xf] %v210_v7  ;;  %v212_v8 = vld [vmem:[%s866_s28 + $0x60] sm:$0xf]  ;;  %v214_v9 = vld [vmem:[%s866_s28 + $0x6c] sm:$0xf] }
  0x1b   : > { %v216_v10 = vld [vmem:[%s866_s28 + $0x78] sm:$0xf]  ;;  %213 = vst [vmem:[%s175_s29 + $0x20] sm:$0xf] %v212_v8  ;;  %215 = vst [vmem:[%s175_s29 + $0x24] sm:$0xf] %v214_v9 }
  0x1c   : > { %217 = vst [vmem:[%s175_s29 + $0x28] sm:$0xf] %v216_v10  ;;  %v218_v11 = vld [vmem:[%s866_s28 + $0x84] sm:$0xf]  ;;  %v220_v12 = vld [vmem:[%s866_s28 + $0x90] sm:$0xf] }
  0x1d   : > { %v222_v13 = vld [vmem:[%s866_s28 + $0x9c] sm:$0xf]  ;;  %219 = vst [vmem:[%s175_s29 + $0x2c] sm:$0xf] %v218_v11  ;;  %221 = vst [vmem:[%s175_s29 + $0x30] sm:$0xf] %v220_v12 }
  0x1e   : > { %223 = vst [vmem:[%s175_s29 + $0x34] sm:$0xf] %v222_v13  ;;  %v224_v14 = vld [vmem:[%s866_s28 + $0xa8] sm:$0xf]  ;;  %v226_v15 = vld [vmem:[%s866_s28 + $0xb4] sm:$0xf] }
  0x1f   : > { %225 = vst [vmem:[%s175_s29 + $0x38] sm:$0xf] %v224_v14  ;;  %227 = vst [vmem:[%s175_s29 + $0x3c] sm:$0xf] %v226_v15 }
  0x20 PF: > { %p650_p8 = scmp.ge.s32.totalorder %s794_s16, 1  ;;  %p287_p9 = scmp.lt.s32.totalorder %s794_s16, 4 }
  0x22   : > { %p288_p10 = pnand %p650_p8, %p287_p9 }
  0x23   : > { %s294_s30 = sand.u32 (!%p288_p10), 1, %s778_s12   ;;  %v796_v16 = vmov (!%p288_p10), 0.0   ;;  %vm797_vm0 = vmmov (!%p288_p10), 0   ;;  %v755_v25 = vld [vmem:[%s920_s0] sm:$0xff] (!%p288_p10)   ;;  %p337_p11 = scmp.lt.s32.totalorder (!%p288_p10), %s786_s14, 2 }
  0x24   : > { %291 = sbr.rel (%p288_p10) target bundleno = 297 (0x129), region = 69  ;;  %685 = vmatprep.subr.bf16.mxu0 (!%p288_p10), %v796_v16  ;;  %s651_s4 = sshll.u32 (!%p288_p10), %s294_s30, 6  ;;  %701 = vmatprep.mubr.msk.bf16.mxu0 (!%p288_p10), %vm797_vm0, %v796_v16 }
  0x25   : > { %s296_s5 = scalar_lea.vmem (!%p288_p10), [#allocation3], %s651_s4  ;;  %s652_s18 = sshll.u32 (!%p288_p10), %s294_s30, 3 }
  0x26   : > { %v747_v17 = vld [vmem:[%s296_s5] sm:$0xff] (!%p288_p10)   ;;  %v748_v18 = vld [vmem:[%s296_s5 + $0x8] sm:$0xff] (!%p288_p10)   ;;  %v749_v19 = vld [vmem:[%s296_s5 + $0x10] sm:$0xff] (!%p288_p10)   ;;  %s326_s19 = scalar_lea.vmem (!%p288_p10), [#allocation4], %s652_s18 }
  0x27   : > { %686 = vmatpush3.bf16.msra.mxu0 (!%p288_p10), %v747_v17  ;;  %v750_v20 = vld [vmem:[%s296_s5 + $0x18] sm:$0xff] (!%p288_p10)   ;;  %v751_v21 = vld [vmem:[%s296_s5 + $0x20] sm:$0xff] (!%p288_p10)   ;;  %v752_v22 = vld [vmem:[%s296_s5 + $0x28] sm:$0xff] (!%p288_p10)  }
  0x28   : > { %687 = vmatprep.subr.bf16.mxu0 (!%p288_p10), %v796_v16  ;;  %v753_v23 = vld [vmem:[%s296_s5 + $0x30] sm:$0xff] (!%p288_p10)   ;;  %v754_v24 = vld [vmem:[%s296_s5 + $0x38] sm:$0xff] (!%p288_p10)  }
  0x2b   : > { %688 = vmatpush3.bf16.msra.mxu0 %v748_v18  ;;  %s338_s8 = scalar_select %p337_p11, %s786_s14, 2 }
  0x2c   : > { %689 = vmatprep.subr.bf16.mxu0 %v796_v16  ;;  %s666_s20 = sshll.u32 (%p853_p6), %s786_s14, 2 }
  0x2d   : > { %s339_s11 = scalar_lea.vmem %s922_s2, %s338_s8  ;;  %s500_s25 = scalar_lea.vmem (%p853_p6), %s923_s3, %s666_s20 }
  0x2e   : > { %v653_v26 = vld [vmem:[%s339_s11] ss:$0 sm:$0xff] }
  0x2f   : > { %690 = vmatpush3.bf16.msra.mxu0 %v749_v19 }
  0x30   : > { %691 = vmatprep.subr.bf16.mxu0 %v796_v16 }
  0x33   : > { %692 = vmatpush3.bf16.msra.mxu0 %v750_v20 }
  0x34   : > { %693 = vmatprep.subr.bf16.mxu0 %v796_v16 }
  0x37   : > { %694 = vmatpush3.bf16.msra.mxu0 %v751_v21 }
  0x38   : > { %695 = vmatprep.subr.bf16.mxu0 %v796_v16 }
  0x3b   : > { %696 = vmatpush3.bf16.msra.mxu0 %v752_v22 }
  0x3c   : > { %697 = vmatprep.subr.bf16.mxu0 %v796_v16 }
  0x3f   : > { %698 = vmatpush3.bf16.msra.mxu0 %v753_v23 }
  0x40   : > { %699 = vmatprep.subr.bf16.mxu0 %v796_v16 }
  0x43   : > { %700 = vmatpush3.bf16.msra.mxu0 %v754_v24 }
  0x46   : > { %702 = vmatmul.mubr.bf16.vlgmr.msra.gmra.mrb[0].mxu0 %v755_v25 }
 0x119   : > { %v463_v27 = vpop.f32.mrb[0].mxu0 }
 0x11a   : > { %v703_v28 = vpop.f32.mrb[1].mxu0  ;;  %v470_v30 = vadd.f32 %v653_v26, %v463_v27  ;;  %495 = sbr.rel (!%p853_p6) target bundleno = 297 (0x129), region = 85 }
 0x11b   : > { %v466_v29 = vpop.f32.mrb[2].mxu0 }
 0x11c   : > { %v471_v31 = vadd.f32 %v653_v26, %v466_v29  ;;  %v704_v32 = vpop.f32.mrb[3].mxu0 }
 0x11e   : > { %v674_v33 = vpack.c.bf16 %v471_v31, %v470_v30 }
 0x120   : > { %675 = vst [vmem:[%s326_s19] sm:$0xff] %v674_v33  }
 0x127   : > { %v516_v34 = vld [vmem:[%s326_s19] sm:$0xf]  ;;  %v518_v35 = vld [vmem:[%s326_s19 + $0x4] sm:$0xf] }
 0x128   : > { %517 = vst [vmem:[%s500_s25] sm:$0xf] %v516_v34  ;;  %519 = vst [vmem:[%s500_s25 + $0xc] sm:$0xf] %v518_v35 }
 0x129 PF: > { %s13_s16 = sadd.s32 1, %s794_s16   ;;  %s925_s12 = smov %s782_s13 }
 0x12a   : > { %p10_p12 = scmp.ge.s32.totalorder %s13_s16, 5   ;;  %s926_s13 = smov %s858_s22 }
 0x12b   : > { %s927_s14 = smov %s790_s15  ;;  %s928_s15 = smov %s930_s17 }
 0x12c   :  { %12 = sbr.rel (!%p10_p12) target bundleno = 3 (0x3), region = 163 }

// kernel: bert_forward.11
= control target key start
LH: loop header
LB: loop body
LE: loop exit
PB: predicated region body
PF: predicated region fallthrough
CT: control target
= control target key end

     0   :  { %s145_s0 = inlined_call_operand.vmem [shape: bf16[16,128], index: 0, kind: input, shape index: {}]   ;;  %s146_s1 = inlined_call_operand.vmem [shape: bf16[16,128], index: 1, kind: input, shape index: {}]   ;;  %s147_s2 = inlined_call_operand.vmem [shape: f32[1,128], index: 2, kind: input, shape index: {}]   ;;  %s148_s3 = inlined_call_operand.vmem [shape: f32[1,128], index: 3, kind: input, shape index: {}]   ;;  %s149_s4 = inlined_call_operand.vmem [shape: bf16[16,128], index: 4, kind: output, shape index: {}]  }
   0x1   :  { %v89_v0 = vld [vmem:[%s145_s0] sm:$0xff]  }
   0x2   :  { %v93_v1 = vld [vmem:[%s146_s1] sm:$0xff]   ;;  %v90_v2 = vunpack.c.l.bf16 %v89_v0  ;;  %v91_v4 = vunpack.c.h.bf16 %v89_v0 }
   0x3   :  { %v94_v3 = vunpack.c.l.bf16 %v93_v1  ;;  %v95_v5 = vunpack.c.h.bf16 %v93_v1  ;;  %v82_v24 = vld [vmem:[%s147_s2] ss:$0 sm:$0xff] }
   0x4   :  { %v83_v28 = vld [vmem:[%s148_s3] ss:$0 sm:$0xff] }
   0x5   :  { %v25_v6 = vadd.f32 %v94_v3, %v90_v2  ;;  %v26_v7 = vadd.f32 %v95_v5, %v91_v4 }
   0x7   :  { %27 = vadd.xlane.f32.xlu0 %v25_v6 }
   0xb   :  { %29 = vadd.xlane.f32.xlu0 %v26_v7 }
  0x94   :  { %v28_v8 = vpop.xlane.xlu0 %27 }
  0x95   :  { %v32_v9 = vmul.f32 0.0078125, %v28_v8 }
  0x97   :  { %v34_v10 = vsub.f32 %v25_v6, %v32_v9 }
  0x98   :  { %v30_v11 = vpop.xlane.xlu0 %29 }
  0x99   :  { %v33_v12 = vmul.f32 0.0078125, %v30_v11  ;;  %v36_v13 = vmul.f32 %v34_v10, %v34_v10 }
  0x9b   :  { %v35_v14 = vsub.f32 %v26_v7, %v33_v12  ;;  %38 = vadd.xlane.f32.xlu1 %v36_v13 }
  0x9d   :  { %v37_v15 = vmul.f32 %v35_v14, %v35_v14 }
  0x9f   :  { %40 = vadd.xlane.f32.xlu1 %v37_v15 }
 0x128   :  { %v39_v16 = vpop.xlane.xlu1 %38 }
 0x129   :  { %v42_v17 = vmul.f32 0.0078125, %v39_v16 }
 0x12b   :  { %v44_v18 = vadd.f32 1e-12, %v42_v17 }
 0x12c   :  { %v41_v19 = vpop.xlane.xlu1 %40 }
 0x12d   :  { %101 = vrsqrt.f32 %v44_v18  ;;  %v43_v20 = vmul.f32 0.0078125, %v41_v19 }
 0x12f   :  { %v45_v21 = vadd.f32 1e-12, %v43_v20 }
 0x131   :  { %103 = vrsqrt.f32 %v45_v21 }
 0x137   :  { %v102_v22 = vpop.eup %101 }
 0x138   :  { %v48_v23 = vmul.f32 %v102_v22, %v34_v10 }
 0x13a   :  { %v57_v26 = vmul.f32 %v82_v24, %v48_v23 }
 0x13b   :  { %v104_v25 = vpop.eup %103 }
 0x13c   :  { %v49_v27 = vmul.f32 %v104_v25, %v35_v14  ;;  %v66_v30 = vadd.f32 %v83_v28, %v57_v26 }
 0x13e   :  { %v58_v29 = vmul.f32 %v82_v24, %v49_v27 }
 0x140   :  { %v67_v31 = vadd.f32 %v83_v28, %v58_v29 }
 0x142   :  { %v99_v32 = vpack.c.bf16 %v67_v31, %v66_v30 }
 0x144   :  { %100 = vst [vmem:[%s149_s4] sm:$0xff] %v99_v32  }

// kernel: bert_forward.14
= control target key start
LH: loop header
LB: loop body
LE: loop exit
PB: predicated region body
PF: predicated region fallthrough
CT: control target
= control target key end

     0   :  { %v291_v0 = vmov 0.0   ;;  %vm292_vm0 = vmmov 0   ;;  %s370_s1 = inlined_call_operand.vmem [shape: bf16[128,128], index: 1, kind: input, shape index: {}]   ;;  %s371_s0 = inlined_call_operand.vmem [shape: bf16[16,128], index: 0, kind: input, shape index: {}]   ;;  %s372_s3 = inlined_call_operand.vmem [shape: bf16[16,128], index: 3, kind: input, shape index: {}]   ;;  %s373_s2 = inlined_call_operand.vmem [shape: f32[1,128], index: 2, kind: input, shape index: {}, may-alias: {2,5}]   ;;  %s374_s4 = inlined_call_operand.vmem [shape: f32[1,128], index: 4, kind: input, shape index: {}]   ;;  %s375_s5 = inlined_call_operand.vmem [shape: f32[1,128], index: 5, kind: input, shape index: {}, may-alias: {2,5}]   ;;  %s376_s6 = inlined_call_operand.vmem [shape: bf16[16,128], index: 6, kind: output, shape index: {}]  }
   0x1   :  { %256 = vmatprep.subr.bf16.mxu0 %v291_v0  ;;  %v278_v1 = vld [vmem:[%s370_s1] sm:$0xff]   ;;  %272 = vmatprep.mubr.msk.bf16.mxu0 %vm292_vm0, %v291_v0  ;;  %v279_v2 = vld [vmem:[%s370_s1 + $0x8] sm:$0xff]   ;;  %v280_v3 = vld [vmem:[%s370_s1 + $0x10] sm:$0xff]  }
   0x2   :  { %257 = vmatpush3.bf16.msra.mxu0 %v278_v1  ;;  %v281_v4 = vld [vmem:[%s370_s1 + $0x18] sm:$0xff]   ;;  %v282_v5 = vld [vmem:[%s370_s1 + $0x20] sm:$0xff]   ;;  %v283_v6 = vld [vmem:[%s370_s1 + $0x28] sm:$0xff]  }
   0x3   :  { %258 = vmatprep.subr.bf16.mxu0 %v291_v0  ;;  %v284_v7 = vld [vmem:[%s370_s1 + $0x30] sm:$0xff]   ;;  %v285_v8 = vld [vmem:[%s370_s1 + $0x38] sm:$0xff]   ;;  %v286_v9 = vld [vmem:[%s371_s0] sm:$0xff]  }
   0x4   :  { %v239_v10 = vld [vmem:[%s372_s3] sm:$0xff]  }
   0x5   :  { %v240_v11 = vunpack.c.l.bf16 %v239_v10  ;;  %v222_v12 = vld [vmem:[%s373_s2] ss:$0 sm:$0xff]  ;;  %v241_v14 = vunpack.c.h.bf16 %v239_v10 }
   0x6   :  { %259 = vmatpush3.bf16.msra.mxu0 %v279_v2  ;;  %v232_v38 = vld [vmem:[%s374_s4] ss:$0 sm:$0xff] }
   0x7   :  { %260 = vmatprep.subr.bf16.mxu0 %v291_v0  ;;  %v39_v13 = vadd.f32 %v240_v11, %v222_v12  ;;  %v40_v18 = vadd.f32 %v241_v14, %v222_v12  ;;  %v233_v42 = vld [vmem:[%s375_s5] ss:$0 sm:$0xff] }
   0xa   :  { %261 = vmatpush3.bf16.msra.mxu0 %v280_v3 }
   0xb   :  { %262 = vmatprep.subr.bf16.mxu0 %v291_v0 }
   0xe   :  { %263 = vmatpush3.bf16.msra.mxu0 %v281_v4 }
   0xf   :  { %264 = vmatprep.subr.bf16.mxu0 %v291_v0 }
  0x12   :  { %265 = vmatpush3.bf16.msra.mxu0 %v282_v5 }
  0x13   :  { %266 = vmatprep.subr.bf16.mxu0 %v291_v0 }
  0x16   :  { %267 = vmatpush3.bf16.msra.mxu0 %v283_v6 }
  0x17   :  { %268 = vmatprep.subr.bf16.mxu0 %v291_v0 }
  0x1a   :  { %269 = vmatpush3.bf16.msra.mxu0 %v284_v7 }
  0x1b   :  { %270 = vmatprep.subr.bf16.mxu0 %v291_v0 }
  0x1e   :  { %271 = vmatpush3.bf16.msra.mxu0 %v285_v8 }
  0x21   :  { %273 = vmatmul.mubr.bf16.vlgmr.msra.gmra.mrb[0].mxu0 %v286_v9 }
  0xf4   :  { %v151_v15 = vpop.f32.mrb[0].mxu0 }
  0xf5   :  { %v158_v16 = vadd.f32 %v151_v15, %v39_v13  ;;  %v274_v17 = vpop.f32.mrb[1].mxu0 }
  0xf6   :  { %v154_v19 = vpop.f32.mrb[2].mxu0 }
  0xf7   :  { %167 = vadd.xlane.f32.xlu0 %v158_v16  ;;  %v275_v20 = vpop.f32.mrb[3].mxu0  ;;  %v159_v21 = vadd.f32 %v154_v19, %v40_v18 }
  0xfb   :  { %169 = vadd.xlane.f32.xlu0 %v159_v21 }
 0x184   :  { %v168_v22 = vpop.xlane.xlu0 %167 }
 0x185   :  { %v172_v23 = vmul.f32 0.0078125, %v168_v22 }
 0x187   :  { %v174_v24 = vsub.f32 %v158_v16, %v172_v23 }
 0x188   :  { %v170_v25 = vpop.xlane.xlu0 %169 }
 0x189   :  { %v173_v26 = vmul.f32 0.0078125, %v170_v25  ;;  %v176_v27 = vmul.f32 %v174_v24, %v174_v24 }
 0x18b   :  { %v175_v28 = vsub.f32 %v159_v21, %v173_v26  ;;  %178 = vadd.xlane.f32.xlu1 %v176_v27 }
 0x18d   :  { %v177_v29 = vmul.f32 %v175_v28, %v175_v28 }
 0x18f   :  { %180 = vadd.xlane.f32.xlu1 %v177_v29 }
 0x218   :  { %v179_v30 = vpop.xlane.xlu1 %178 }
 0x219   :  { %v182_v31 = vmul.f32 0.0078125, %v179_v30 }
 0x21b   :  { %v184_v32 = vadd.f32 1e-12, %v182_v31 }
 0x21c   :  { %v181_v33 = vpop.xlane.xlu1 %180 }
 0x21d   :  { %287 = vrsqrt.f32 %v184_v32  ;;  %v183_v34 = vmul.f32 0.0078125, %v181_v33 }
 0x21f   :  { %v185_v35 = vadd.f32 1e-12, %v183_v34 }
 0x221   :  { %289 = vrsqrt.f32 %v185_v35 }
 0x227   :  { %v288_v36 = vpop.eup %287 }
 0x228   :  { %v188_v37 = vmul.f32 %v288_v36, %v174_v24 }
 0x22a   :  { %v197_v40 = vmul.f32 %v232_v38, %v188_v37 }
 0x22b   :  { %v290_v39 = vpop.eup %289 }
 0x22c   :  { %v189_v41 = vmul.f32 %v290_v39, %v175_v28  ;;  %v206_v44 = vadd.f32 %v233_v42, %v197_v40 }
 0x22e   :  { %v198_v43 = vmul.f32 %v232_v38, %v189_v41 }
 0x230   :  { %v207_v45 = vadd.f32 %v233_v42, %v198_v43 }
 0x232   :  { %v245_v46 = vpack.c.bf16 %v207_v45, %v206_v44 }
 0x234   :  { %246 = vst [vmem:[%s376_s6] sm:$0xff] %v245_v46  }

// kernel: bert_forward.13
= control target key start
LH: loop header
LB: loop body
LE: loop exit
PB: predicated region body
PF: predicated region fallthrough
CT: control target
= control target key end

     0   :  { %s871_s15 = smov 0   ;;  %s873_s16 = smov 0   ;;  %s951_s0 = inlined_call_operand.vmem [shape: bf16[16,384], index: 0, kind: input, shape index: {}, may-alias: {0,1,2}]   ;;  %s952_s1 = inlined_call_operand.vmem [shape: bf16[16,384], index: 1, kind: input, shape index: {}, may-alias: {0,1,2}]   ;;  %s953_s2 = inlined_call_operand.vmem [shape: bf16[16,384], index: 2, kind: input, shape index: {}, may-alias: {0,1,2}]   ;;  %s954_s3 = inlined_call_operand.vmem [shape: f32[2,1,8], index: 3, kind: input, shape index: {}]   ;;  %s955_s4 = inlined_call_operand.vmem [shape: bf16[16,128], index: 4, kind: output, shape index: {}]  }
   0x1   :  { %s875_s17 = smov 0  }
   0x2 LB: > { %s33_s18 = sadd.s32 1, %s837_s16  ;;  %p725_p0 = scmp.ge.s32.totalorder %s841_s17, 1  ;;  %s841_s17 = sphi %s875_s17, %s14_s17   ;;  %s837_s16 = sphi %s873_s16, %s957_s16   ;;  %s833_s15 = sphi %s871_s15, %s956_s15  }
   0x3   : > { %p35_p1 = scmp.ge.s32.totalorder %s33_s18, 2  ;;  %p240_p2 = scmp.lt.s32.totalorder %s841_s17, 3 }
   0x5   : > { %s959_s18 = smov (%p35_p1, %s33_s18), 0  ;;  %p241_p3 = pnand %p725_p0, %p240_p2 }
   0x6   : > { %p295_p4 = scmp.lt.s32.totalorder (!%p241_p3), %s833_s15, 1  ;;  %v843_v0 = vmov (!%p241_p3), 0.0   ;;  %vm844_vm0 = vmmov (!%p241_p3), 0   ;;  %vm341_vm1 = vcmask (!%p241_p3), 523264   ;;  %vm396_vm2 = vcmask (!%p241_p3), 64512   ;;  %s845_s30 = smov (!%p241_p3), 64  }
   0x7   : > { %244 = sbr.rel (%p241_p3) target bundleno = 1430 (0x596), region = 36  ;;  %754 = vmatprep.subr.bf16.mxu0 (!%p241_p3), %v843_v0  ;;  %756 = vmatprep.mubr.msk.bf16.mxu0 (!%p241_p3), %vm844_vm0, %v843_v0  ;;  %vm412_vm3 = vcmask (!%p241_p3), 1043456   ;;  %vm457_vm4 = vcmask (!%p241_p3), 519168   ;;  %vm590_vm5 = vcmask (!%p241_p3), 1043968  }
   0x8   : > { %760 = vmatprep.subr.bf16.mxu1 (!%p241_p3), %v843_v0  ;;  %762 = vmatprep.mubr.msk.bf16.mxu1 (!%p241_p3), %vm844_vm0, %v843_v0 }
   0xe   : > { %s961_s15 = smov (!%p295_p4, %s833_s15), 1 }
   0xf   : > { %s894_s19 = smul.u32 12, %s961_s15  ;;  %s326_s29 = scalar_lea.vmem %s954_s3, %s961_s15 }
  0x10   : > { %v731_v5 = vld [vmem:[%s326_s29] ss:$0 sm:$0xff]  ;;  %s729_s9 = sshll.u32 %s961_s15, 2 }
  0x11   : > { %s742_s20 = sadd.s32 4, %s894_s19  ;;  %s302_s23 = scalar_lea.vmem %s951_s0, %s894_s19 }
  0x12   : > { %s312_s26 = scalar_lea.vmem %s952_s1, %s742_s20  ;;  %v338_v3 = vld [vmem:[%s302_s23] sm:$0xf]  ;;  %s744_s5 = sadd.s32 8, %s894_s19 }
  0x13   : > { %v339_v1 = vld [vmem:[%s312_s26] sm:$0xf]  ;;  %s919_s8 = scalar_lea.vmem %s953_s2, %s744_s5  ;;  %s931_s12 = scalar_lea.vmem %s955_s4, %s729_s9 }
  0x14   : > { %v346_v2 = vsel %vm341_vm1, %v339_v1, 0  ;;  %v808_v12 = vld [vmem:[%s312_s26] ss:$0 sps:$4 sm:$0xff]  }
  0x15   : > { %755 = vmatpush3.bf16.xpose.msra.mxu0 %v346_v2  ;;  %470 = vrot.lane.b32.xlu1 %v808_v12, %s845_s30  ;;  %v809_v13 = vld [vmem:[%s302_s23] ss:$0 sps:$4 sm:$0xff]  }
  0x16   : > { %772 = vmatprep.subr.bf16.mxu0 %v843_v0  ;;  %v340_v19 = vld [vmem:[%s919_s8] sm:$0xf] }
  0x17   : > { %v414_v20 = vsel %vm412_vm3, %v340_v19, 0  ;;  %v810_v40 = vld [vmem:[%s919_s8] ss:$0 sps:$4 sm:$0xff]  }
  0x18   : > { %761 = vmatpush3.bf16.msra.mxu1 %v414_v20 }
  0x19   : > { %465 = vrot.lane.b32.xlu1 %v809_v13, %s845_s30  ;;  %766 = vmatprep.subr.bf16.mxu1 %v843_v0 }
  0x1c   : > { %757 = vmatmul.mubr.msk.bf16.vlgmr.msra.gmra.mrb[0].mxu0 %vm341_vm1, %v338_v3 }
  0x1d   : > { %774 = vmatprep.mubr.msk.bf16.mxu0 %vm844_vm0, %v843_v0 }
  0x87   : > { %v471_v23 = vpop.permute.xlu1 %470 }
  0x88   : > { %v476_v25 = vsel %vm341_vm1, %v471_v23, 0 }
  0x8b   : > { %v466_v27 = vpop.permute.xlu1 %465 }
  0xef   : > { %v382_v4 = vpop.f32.mrb[0].mxu0 }
  0xf0   : > { %v388_v6 = vmul.f32 0.125, %v382_v4  ;;  %v758_v7 = vpop.f32.mrb[1].mxu0 }
  0xf1   : > { %v385_v8 = vpop.f32.mrb[2].mxu0 }
  0xf2   : > { %v759_v9 = vpop.f32.mrb[3].mxu0  ;;  %v395_v10 = vadd.f32 %v731_v5, %v388_v6 }
  0xf4   : > { %v397_v11 = vsel %vm396_vm2, %v395_v10, -inf }
  0xf5   : > { %398 = vmax.xlane.f32.xlu0 %v397_v11 }
 0x182   : > { %v399_v14 = vpop.xlane.xlu0 %398 }
 0x183   : > { %v400_v15 = vsub.f32 %v395_v10, %v399_v14 }
 0x185   : > { %v401_v16 = vmul.f32 1.442695, %v400_v15 }
 0x187   : > { %811 = vpow2.f32 %v401_v16 }
 0x191   : > { %v812_v17 = vpop.eup %811 }
 0x192   : > { %v403_v18 = vsel %vm396_vm2, %v812_v17, 0.0 }
 0x193   : > { %404 = vadd.xlane.f32.xlu0 %v403_v18 }
 0x220   : > { %v405_v21 = vpop.xlane.xlu0 %404 }
 0x221   : > { %813 = vrcp.f32 %v405_v21 }
 0x22b   : > { %v814_v22 = vpop.eup %813 }
 0x22c   : > { %v407_v24 = vmul.f32 %v814_v22, %v812_v17 }
 0x22e   : > { %v408_v26 = vpack.c.bf16 %v407_v24, %v407_v24 }
 0x230   : > { %763 = vmatmul.mubr.msk.bf16.vlgmr.msra.gmra.mrb[0].mxu1 %vm396_vm2, %v408_v26 }
 0x231   : > { %767 = vmatpush3.bf16.xpose.msra.mxu1 %v476_v25  ;;  %768 = vmatprep.mubr.msk.bf16.mxu1 %vm844_vm0, %v843_v0 }
 0x238   : > { %769 = vmatmul.mubr.msk.bf16.vlgmr.msra.gmra.mrb[4].mxu1 %vm341_vm1, %v466_v27 }
 0x303   : > { %v450_v28 = vpop.f32.mrb[0].mxu1 }
 0x304   : > { %v456_v29 = vpack.c.bf16 %v450_v28, %v450_v28  ;;  %v764_v30 = vpop.f32.mrb[1].mxu1 }
 0x305   : > { %v453_v31 = vpop.f32.mrb[2].mxu1 }
 0x306   : > { %458 = vst.msk [vmem:[%s931_s12] sm:$0xf] %vm457_vm4, %v456_v29  ;;  %v765_v32 = vpop.f32.mrb[3].mxu1 }
 0x30b   : > { %v512_v33 = vpop.f32.mrb[4].mxu1 }
 0x30c   : > { %v518_v34 = vmul.f32 0.125, %v512_v33  ;;  %v770_v35 = vpop.f32.mrb[5].mxu1 }
 0x30d   : > { %v515_v36 = vpop.f32.mrb[6].mxu1 }
 0x30e   : > { %v771_v37 = vpop.f32.mrb[7].mxu1  ;;  %v519_v38 = vadd.f32 %v731_v5, %v518_v34 }
 0x310   : > { %v520_v39 = vsel %vm396_vm2, %v519_v38, -inf }
 0x311   : > { %521 = vmax.xlane.f32.xlu0 %v520_v39 }
 0x327   : > { %535 = vrot.lane.b32.xlu0 %v810_v40, %s845_s30 }
 0x39e   : > { %v522_v41 = vpop.xlane.xlu0 %521 }
 0x39f   : > { %v523_v42 = vsub.f32 %v519_v38, %v522_v41 }
 0x3a1   : > { %v524_v43 = vmul.f32 1.442695, %v523_v42 }
 0x3a2   : > { %v536_v46 = vpop.permute.xlu0 %535 }
 0x3a3   : > { %815 = vpow2.f32 %v524_v43  ;;  %v541_v47 = vsel %vm412_vm3, %v536_v46, 0 }
 0x3a4   : > { %773 = vmatpush3.bf16.msra.mxu0 %v541_v47 }
 0x3ad   : > { %v816_v44 = vpop.eup %815 }
 0x3ae   : > { %v526_v45 = vsel %vm396_vm2, %v816_v44, 0.0 }
 0x3af   : > { %527 = vadd.xlane.f32.xlu1 %v526_v45 }
 0x43c   : > { %v528_v48 = vpop.xlane.xlu1 %527 }
 0x43d   : > { %817 = vrcp.f32 %v528_v48 }
 0x447   : > { %v818_v49 = vpop.eup %817 }
 0x448   : > { %v530_v50 = vmul.f32 %v818_v49, %v816_v44 }
 0x44a   : > { %v531_v51 = vpack.c.bf16 %v530_v50, %v530_v50 }
 0x44c   : > { %775 = vmatmul.mubr.msk.bf16.vlgmr.msra.gmra.mrb[4].mxu0 %vm396_vm2, %v531_v51 }
 0x51f   : > { %v577_v52 = vpop.f32.mrb[4].mxu0 }
 0x520   : > { %v745_v53 = vpack.c.bf16 %v577_v52, %v577_v52  ;;  %v776_v54 = vpop.f32.mrb[5].mxu0 }
 0x521   : > { %v580_v55 = vpop.f32.mrb[6].mxu0 }
 0x522   : > { %587 = vrot.lane.b32.xlu0 %v745_v53, %s845_s30  ;;  %v777_v56 = vpop.f32.mrb[7].mxu0 }
 0x594   : > { %v588_v57 = vpop.permute.xlu0 %587 }
 0x595   : > { %591 = vst.msk [vmem:[%s931_s12] sm:$0xf] %vm590_vm5, %v588_v57 }
 0x596 PF: > { %s14_s17 = sadd.s32 1, %s841_s17   ;;  %s956_s15 = smov %s837_s16 }
 0x597   : > { %p11_p5 = scmp.ge.s32.totalorder %s14_s17, 4   ;;  %s957_s16 = smov %s959_s18 }
 0x599   :  { %13 = sbr.rel (!%p11_p5) target bundleno = 2 (0x2), region = 75 }

// kernel: bert_forward.15
= control target key start
LH: loop header
LB: loop body
LE: loop exit
PB: predicated region body
PF: predicated region fallthrough
CT: control target
= control target key end

     0   :  { %v581_v1 = vmov 0   ;;  %v21_v34 = vlaneseq  ;;  %s772_s1 = inlined_call_operand.vmem [shape: bf16[128,512], index: 1, kind: input, shape index: {}]   ;;  %s773_s0 = inlined_call_operand.vmem [shape: bf16[16,128], index: 0, kind: input, shape index: {}]   ;;  %s774_s2 = inlined_call_operand.vmem [shape: f32[1,512], index: 2, kind: input, shape index: {}]   ;;  %s775_s3 = inlined_call_operand.vmem [shape: bf16[16,512], index: 3, kind: output, shape index: {}]  }
   0x1   :  { %v516_v0 = vld [vmem:[%s772_s1 + $0x4] ss:$16 sps:$4 sm:$0xff]   ;;  %289 = vmatprep.mubr.bf16.mxu0 %v581_v1  ;;  %332 = vmatprep.mubr.bf16.mxu1 %v581_v1  ;;  %v518_v2 = vld [vmem:[%s772_s1 + $0xc] ss:$16 sps:$4 sm:$0xff]   ;;  %v520_v3 = vld [vmem:[%s772_s1] ss:$16 sps:$4 sm:$0xff]  }
   0x2   :  { %257 = vmatprep.subr.bf16.mxu0 %v516_v0  ;;  %v521_v4 = vld [vmem:[%s772_s1 + $0x8] ss:$16 sps:$4 sm:$0xff]   ;;  %300 = vmatprep.subr.bf16.mxu1 %v518_v2  ;;  %v522_v5 = vld [vmem:[%s772_s1 + $0x24] ss:$16 sps:$4 sm:$0xff]   ;;  %v524_v6 = vld [vmem:[%s772_s1 + $0x2c] ss:$16 sps:$4 sm:$0xff]  }
   0x3   :  { %258 = vmatpush1.bf16.msra.mxu0 %v520_v3  ;;  %301 = vmatpush1.bf16.msra.mxu1 %v521_v4  ;;  %v526_v7 = vld [vmem:[%s772_s1 + $0x20] ss:$16 sps:$4 sm:$0xff]   ;;  %v527_v8 = vld [vmem:[%s772_s1 + $0x28] ss:$16 sps:$4 sm:$0xff]   ;;  %v528_v9 = vld [vmem:[%s772_s1 + $0x44] ss:$16 sps:$4 sm:$0xff]  }
   0x4   :  { %259 = vmatprep.subr.bf16.mxu0 %v522_v5  ;;  %302 = vmatprep.subr.bf16.mxu1 %v524_v6  ;;  %v530_v10 = vld [vmem:[%s772_s1 + $0x4c] ss:$16 sps:$4 sm:$0xff]   ;;  %v532_v11 = vld [vmem:[%s772_s1 + $0x40] ss:$16 sps:$4 sm:$0xff]   ;;  %v533_v12 = vld [vmem:[%s772_s1 + $0x48] ss:$16 sps:$4 sm:$0xff]  }
   0x5   :  { %v534_v13 = vld [vmem:[%s772_s1 + $0x64] ss:$16 sps:$4 sm:$0xff]   ;;  %v536_v14 = vld [vmem:[%s772_s1 + $0x6c] ss:$16 sps:$4 sm:$0xff]   ;;  %v538_v15 = vld [vmem:[%s772_s1 + $0x60] ss:$16 sps:$4 sm:$0xff]  }
   0x6   :  { %v539_v16 = vld [vmem:[%s772_s1 + $0x68] ss:$16 sps:$4 sm:$0xff]   ;;  %v540_v17 = vld [vmem:[%s772_s1 + $0x84] ss:$16 sps:$4 sm:$0xff]   ;;  %v542_v18 = vld [vmem:[%s772_s1 + $0x8c] ss:$16 sps:$4 sm:$0xff]  }
   0x7   :  { %260 = vmatpush1.bf16.msra.mxu0 %v526_v7  ;;  %303 = vmatpush1.bf16.msra.mxu1 %v527_v8  ;;  %v544_v19 = vld [vmem:[%s772_s1 + $0x80] ss:$16 sps:$4 sm:$0xff]   ;;  %v545_v20 = vld [vmem:[%s772_s1 + $0x88] ss:$16 sps:$4 sm:$0xff]   ;;  %v546_v21 = vld [vmem:[%s772_s1 + $0xa4] ss:$16 sps:$4 sm:$0xff]  }
   0x8   :  { %261 = vmatprep.subr.bf16.mxu0 %v528_v9  ;;  %304 = vmatprep.subr.bf16.mxu1 %v530_v10  ;;  %v548_v22 = vld [vmem:[%s772_s1 + $0xac] ss:$16 sps:$4 sm:$0xff]   ;;  %v550_v23 = vld [vmem:[%s772_s1 + $0xa0] ss:$16 sps:$4 sm:$0xff]   ;;  %v551_v24 = vld [vmem:[%s772_s1 + $0xa8] ss:$16 sps:$4 sm:$0xff]  }
   0x9   :  { %v552_v25 = vld [vmem:[%s772_s1 + $0xc4] ss:$16 sps:$4 sm:$0xff]   ;;  %v554_v26 = vld [vmem:[%s772_s1 + $0xcc] ss:$16 sps:$4 sm:$0xff]   ;;  %v556_v27 = vld [vmem:[%s772_s1 + $0xc0] ss:$16 sps:$4 sm:$0xff]  }
   0xa   :  { %v557_v28 = vld [vmem:[%s772_s1 + $0xc8] ss:$16 sps:$4 sm:$0xff]   ;;  %v558_v29 = vld [vmem:[%s772_s1 + $0xe4] ss:$16 sps:$4 sm:$0xff]   ;;  %v560_v30 = vld [vmem:[%s772_s1 + $0xec] ss:$16 sps:$4 sm:$0xff]  }
   0xb   :  { %262 = vmatpush1.bf16.msra.mxu0 %v532_v11  ;;  %305 = vmatpush1.bf16.msra.mxu1 %v533_v12  ;;  %v562_v31 = vld [vmem:[%s772_s1 + $0xe0] ss:$16 sps:$4 sm:$0xff]   ;;  %v563_v32 = vld [vmem:[%s772_s1 + $0xe8] ss:$16 sps:$4 sm:$0xff]   ;;  %v22_v35 = vshrl.u32 %v21_v34, 7 }
   0xc   :  { %263 = vmatprep.subr.bf16.mxu0 %v534_v13  ;;  %306 = vmatprep.subr.bf16.mxu1 %v536_v14  ;;  %v564_v33 = vld [vmem:[%s773_s0] sm:$0xff]  }
   0xd   :  { %v23_v36 = vsub.s32 0, %v22_v35  ;;  %v31_v37 = vsub.s32 2, %v22_v35  ;;  %v19_v38 = vld [vmem:[%s774_s2] sm:$0xf]  ;;  %v27_v39 = vsub.s32 1, %v22_v35  ;;  %v35_v40 = vsub.s32 3, %v22_v35 }
   0xf   :  { %264 = vmatpush1.bf16.msra.mxu0 %v538_v15  ;;  %307 = vmatpush1.bf16.msra.mxu1 %v539_v16  ;;  %v24_v41 = vrot.slane %v19_v38, %v23_v36  ;;  %v32_v42 = vrot.slane %v19_v38, %v31_v37  ;;  %v28_v43 = vrot.slane %v19_v38, %v27_v39 }
  0x10   :  { %265 = vmatprep.subr.bf16.mxu0 %v540_v17  ;;  %308 = vmatprep.subr.bf16.mxu1 %v542_v18  ;;  %v36_v44 = vrot.slane %v19_v38, %v35_v40 }
  0x13   :  { %266 = vmatpush1.bf16.msra.mxu0 %v544_v19  ;;  %309 = vmatpush1.bf16.msra.mxu1 %v545_v20 }
  0x14   :  { %267 = vmatprep.subr.bf16.mxu0 %v546_v21  ;;  %310 = vmatprep.subr.bf16.mxu1 %v548_v22 }
  0x17   :  { %268 = vmatpush1.bf16.msra.mxu0 %v550_v23  ;;  %311 = vmatpush1.bf16.msra.mxu1 %v551_v24 }
  0x18   :  { %269 = vmatprep.subr.bf16.mxu0 %v552_v25  ;;  %312 = vmatprep.subr.bf16.mxu1 %v554_v26 }
  0x1b   :  { %270 = vmatpush1.bf16.msra.mxu0 %v556_v27  ;;  %313 = vmatpush1.bf16.msra.mxu1 %v557_v28 }
  0x1c   :  { %271 = vmatprep.subr.bf16.mxu0 %v558_v29  ;;  %314 = vmatprep.subr.bf16.mxu1 %v560_v30 }
  0x1f   :  { %272 = vmatpush1.bf16.msra.mxu0 %v562_v31  ;;  %315 = vmatpush1.bf16.msra.mxu1 %v563_v32 }
  0x22   :  { %290 = vmatmul.mubr.bf16.vlgmr.msra.gmra.mrb[0].mxu0 %v564_v33  ;;  %333 = vmatmul.mubr.bf16.vlgmr.msra.gmra.mrb[0].mxu1 %v564_v33 }
  0xf5   :  { %v291_v45 = vpop.f32.mrb[0].mxu0  ;;  %v334_v46 = vpop.f32.mrb[0].mxu1 }
  0xf6   :  { %v704_v47 = vadd.f32 %v291_v45, %v24_v41  ;;  %v706_v48 = vadd.f32 %v334_v46, %v32_v42  ;;  %v293_v49 = vpop.f32.mrb[1].mxu0  ;;  %v336_v50 = vpop.f32.mrb[1].mxu1 }
  0xf7   :  { %v708_v51 = vadd.f32 %v293_v49, %v28_v43  ;;  %v710_v52 = vadd.f32 %v336_v50, %v36_v44  ;;  %v295_v53 = vpop.f32.mrb[2].mxu0  ;;  %v338_v54 = vpop.f32.mrb[2].mxu1 }
  0xf8   :  { %v378_v55 = vmul.f32 0.044715, %v704_v47  ;;  %v380_v56 = vmul.f32 0.044715, %v706_v48  ;;  %v718_v61 = vadd.f32 %v295_v53, %v24_v41  ;;  %v720_v62 = vadd.f32 %v338_v54, %v32_v42  ;;  %v297_v63 = vpop.f32.mrb[3].mxu0  ;;  %v340_v0 = vpop.f32.mrb[3].mxu1 }
  0xf9   :  { %v379_v57 = vmul.f32 0.044715, %v708_v51  ;;  %v381_v58 = vmul.f32 0.044715, %v710_v52  ;;  %v724_v3 = vadd.f32 %v297_v63, %v28_v43  ;;  %v735_v13 = vadd.f32 %v340_v0, %v36_v44 }
  0xfa   :  { %v386_v59 = vmul.f32 %v378_v55, %v704_v47  ;;  %v388_v60 = vmul.f32 %v380_v56, %v706_v48  ;;  %v382_v6 = vmul.f32 0.044715, %v718_v61  ;;  %v384_v9 = vmul.f32 0.044715, %v720_v62 }
  0xfb   :  { %v387_v1 = vmul.f32 %v379_v57, %v708_v51  ;;  %v389_v2 = vmul.f32 %v381_v58, %v710_v52  ;;  %v383_v17 = vmul.f32 0.044715, %v724_v3  ;;  %v385_v26 = vmul.f32 0.044715, %v735_v13 }
  0xfc   :  { %v394_v4 = vmul.f32 %v386_v59, %v704_v47  ;;  %v396_v5 = vmul.f32 %v388_v60, %v706_v48  ;;  %v390_v12 = vmul.f32 %v382_v6, %v718_v61  ;;  %v392_v16 = vmul.f32 %v384_v9, %v720_v62 }
  0xfd   :  { %v395_v7 = vmul.f32 %v387_v1, %v708_v51  ;;  %v397_v8 = vmul.f32 %v389_v2, %v710_v52  ;;  %v391_v24 = vmul.f32 %v383_v17, %v724_v3  ;;  %v393_v30 = vmul.f32 %v385_v26, %v735_v13 }
  0xfe   :  { %v402_v10 = vadd.f32 %v394_v4, %v704_v47  ;;  %v404_v11 = vadd.f32 %v396_v5, %v706_v48  ;;  %v398_v20 = vmul.f32 %v390_v12, %v718_v61  ;;  %v400_v23 = vmul.f32 %v392_v16, %v720_v62 }
  0xff   :  { %v403_v14 = vadd.f32 %v395_v7, %v708_v51  ;;  %v405_v15 = vadd.f32 %v397_v8, %v710_v52  ;;  %v399_v28 = vmul.f32 %v391_v24, %v724_v3  ;;  %v401_v33 = vmul.f32 %v393_v30, %v735_v13 }
 0x100   :  { %v410_v18 = vmul.f32 0.7978846, %v402_v10  ;;  %v412_v19 = vmul.f32 0.7978846, %v404_v11  ;;  %v406_v25 = vadd.f32 %v398_v20, %v718_v61  ;;  %v408_v27 = vadd.f32 %v400_v23, %v720_v62 }
 0x101   :  { %v411_v21 = vmul.f32 0.7978846, %v403_v14  ;;  %v413_v22 = vmul.f32 0.7978846, %v405_v15  ;;  %v407_v32 = vadd.f32 %v399_v28, %v724_v3  ;;  %v409_v35 = vadd.f32 %v401_v33, %v735_v13 }
 0x102   :  { %565 = vtanh.f32 %v410_v18  ;;  %v414_v29 = vmul.f32 0.7978846, %v406_v25  ;;  %v416_v31 = vmul.f32 0.7978846, %v408_v27  ;;  %v370_v39 = vmul.f32 0.5, %v704_v47 }
 0x103   :  { %567 = vtanh.f32 %v412_v19  ;;  %v415_v34 = vmul.f32 0.7978846, %v407_v32  ;;  %v417_v36 = vmul.f32 0.7978846, %v409_v35  ;;  %v372_v42 = vmul.f32 0.5, %v706_v48 }
 0x104   :  { %569 = vtanh.f32 %v411_v21  ;;  %v371_v46 = vmul.f32 0.5, %v708_v51  ;;  %v373_v54 = vmul.f32 0.5, %v710_v52  ;;  %v374_v47 = vmul.f32 0.5, %v718_v61 }
 0x105   :  { %571 = vtanh.f32 %v413_v22  ;;  %v375_v2 = vmul.f32 0.5, %v724_v3  ;;  %v376_v52 = vmul.f32 0.5, %v720_v62  ;;  %v377_v6 = vmul.f32 0.5, %v735_v13 }
 0x106   :  { %573 = vtanh.f32 %v414_v29 }
 0x107   :  { %575 = vtanh.f32 %v416_v31 }
 0x108   :  { %577 = vtanh.f32 %v415_v34 }
 0x109   :  { %579 = vtanh.f32 %v417_v36 }
 0x10c   :  { %v566_v37 = vpop.eup %565 }
 0x10d   :  { %v568_v38 = vpop.eup %567  ;;  %v426_v40 = vadd.f32 1.0, %v566_v37 }
 0x10e   :  { %v570_v41 = vpop.eup %569  ;;  %v428_v43 = vadd.f32 1.0, %v568_v38 }
 0x10f   :  { %v572_v44 = vpop.eup %571  ;;  %v434_v45 = vmul.f32 %v426_v40, %v370_v39  ;;  %v427_v49 = vadd.f32 1.0, %v570_v41 }
 0x110   :  { %v574_v50 = vpop.eup %573  ;;  %v436_v53 = vmul.f32 %v428_v43, %v372_v42  ;;  %v429_v55 = vadd.f32 1.0, %v572_v44 }
 0x111   :  { %v576_v56 = vpop.eup %575  ;;  %v435_v57 = vmul.f32 %v427_v49, %v371_v46  ;;  %v430_v58 = vadd.f32 1.0, %v574_v50 }
 0x112   :  { %v437_v59 = vmul.f32 %v429_v55, %v373_v54  ;;  %v578_v60 = vpop.eup %577  ;;  %v432_v48 = vadd.f32 1.0, %v576_v56 }
 0x113   :  { %v511_v63 = vpack.c.bf16 %v435_v57, %v434_v45  ;;  %v438_v1 = vmul.f32 %v430_v58, %v374_v47  ;;  %v431_v51 = vadd.f32 1.0, %v578_v60  ;;  %v580_v4 = vpop.eup %579 }
 0x114   :  { %v512_v0 = vpack.c.bf16 %v437_v59, %v436_v53  ;;  %v440_v5 = vmul.f32 %v432_v48, %v376_v52  ;;  %v433_v7 = vadd.f32 1.0, %v580_v4 }
 0x115   :  { %466 = vst [vmem:[%s775_s3] sm:$0xff] %v511_v63  ;;  %v439_v61 = vmul.f32 %v431_v51, %v375_v2 }
 0x116   :  { %467 = vst [vmem:[%s775_s3 + $0x8] sm:$0xff] %v512_v0  ;;  %v441_v9 = vmul.f32 %v433_v7, %v377_v6 }
 0x117   :  { %v513_v8 = vpack.c.bf16 %v439_v61, %v438_v1 }
 0x118   :  { %v514_v3 = vpack.c.bf16 %v441_v9, %v440_v5 }
 0x119   :  { %468 = vst [vmem:[%s775_s3 + $0x10] sm:$0xff] %v513_v8 }
 0x11a   :  { %469 = vst [vmem:[%s775_s3 + $0x18] sm:$0xff] %v514_v3 }

// kernel: bert_forward.16
= control target key start
LH: loop header
LB: loop body
LE: loop exit
PB: predicated region body
PF: predicated region fallthrough
CT: control target
= control target key end

     0   :  { %s767_s1 = inlined_call_operand.vmem [shape: bf16[512,128], index: 1, kind: input, shape index: {}]   ;;  %s768_s0 = inlined_call_operand.vmem [shape: bf16[16,512], index: 0, kind: input, shape index: {}]   ;;  %s769_s3 = inlined_call_operand.vmem [shape: bf16[16,128], index: 3, kind: input, shape index: {}]   ;;  %s770_s2 = inlined_call_operand.vmem [shape: f32[1,128], index: 2, kind: input, shape index: {}, may-alias: {2,5}]   ;;  %s771_s4 = inlined_call_operand.vmem [shape: f32[1,128], index: 4, kind: input, shape index: {}]   ;;  %s772_s5 = inlined_call_operand.vmem [shape: f32[1,128], index: 5, kind: input, shape index: {}, may-alias: {2,5}]   ;;  %s773_s6 = inlined_call_operand.vmem [shape: bf16[16,128], index: 6, kind: output, shape index: {}]  }
   0x1   :  { %v567_v0 = vld [vmem:[%s767_s1 + $0x40] sm:$0xff]   ;;  %v571_v4 = vld [vmem:[%s767_s1 + $0x48] sm:$0xff]   ;;  %v575_v8 = vld [vmem:[%s767_s1 + $0x50] sm:$0xff]  }
   0x2   :  { %v568_v1 = vld [vmem:[%s767_s1 + $0xc0] sm:$0xff]   ;;  %523 = vmatprep.subr.bf16.mxu0 %v567_v0  ;;  %v572_v5 = vld [vmem:[%s767_s1 + $0xc8] sm:$0xff]   ;;  %v576_v9 = vld [vmem:[%s767_s1 + $0xd0] sm:$0xff]  }
   0x3   :  { %v569_v2 = vld [vmem:[%s767_s1] sm:$0xff]   ;;  %545 = vmatprep.subr.bf16.mxu1 %v568_v1  ;;  %v573_v6 = vld [vmem:[%s767_s1 + $0x8] sm:$0xff]   ;;  %v577_v10 = vld [vmem:[%s767_s1 + $0x10] sm:$0xff]  }
   0x4   :  { %v570_v3 = vld [vmem:[%s767_s1 + $0x80] sm:$0xff]   ;;  %524 = vmatpush3.bf16.msra.mxu0 %v569_v2  ;;  %v574_v7 = vld [vmem:[%s767_s1 + $0x88] sm:$0xff]   ;;  %v578_v11 = vld [vmem:[%s767_s1 + $0x90] sm:$0xff]  }
   0x5   :  { %546 = vmatpush3.bf16.msra.mxu1 %v570_v3  ;;  %525 = vmatprep.subr.bf16.mxu0 %v571_v4  ;;  %v579_v12 = vld [vmem:[%s767_s1 + $0x58] sm:$0xff]   ;;  %v583_v16 = vld [vmem:[%s767_s1 + $0x60] sm:$0xff]   ;;  %v587_v20 = vld [vmem:[%s767_s1 + $0x68] sm:$0xff]  }
   0x6   :  { %547 = vmatprep.subr.bf16.mxu1 %v572_v5  ;;  %v580_v13 = vld [vmem:[%s767_s1 + $0xd8] sm:$0xff]   ;;  %v584_v17 = vld [vmem:[%s767_s1 + $0xe0] sm:$0xff]   ;;  %v588_v21 = vld [vmem:[%s767_s1 + $0xe8] sm:$0xff]  }
   0x7   :  { %v581_v14 = vld [vmem:[%s767_s1 + $0x18] sm:$0xff]   ;;  %v585_v18 = vld [vmem:[%s767_s1 + $0x20] sm:$0xff]   ;;  %v589_v22 = vld [vmem:[%s767_s1 + $0x28] sm:$0xff]  }
   0x8   :  { %526 = vmatpush3.bf16.msra.mxu0 %v573_v6  ;;  %v582_v15 = vld [vmem:[%s767_s1 + $0x98] sm:$0xff]   ;;  %v586_v19 = vld [vmem:[%s767_s1 + $0xa0] sm:$0xff]   ;;  %v590_v23 = vld [vmem:[%s767_s1 + $0xa8] sm:$0xff]  }
   0x9   :  { %548 = vmatpush3.bf16.msra.mxu1 %v574_v7  ;;  %527 = vmatprep.subr.bf16.mxu0 %v575_v8  ;;  %v591_v24 = vld [vmem:[%s767_s1 + $0x70] sm:$0xff]   ;;  %v595_v28 = vld [vmem:[%s767_s1 + $0x78] sm:$0xff]   ;;  %v515_v36 = vld [vmem:[%s769_s3] sm:$0xff]  }
   0xa   :  { %549 = vmatprep.subr.bf16.mxu1 %v576_v9  ;;  %v592_v25 = vld [vmem:[%s767_s1 + $0xf0] sm:$0xff]   ;;  %v596_v29 = vld [vmem:[%s767_s1 + $0xf8] sm:$0xff]   ;;  %v516_v37 = vunpack.c.l.bf16 %v515_v36  ;;  %v471_v39 = vld [vmem:[%s770_s2] ss:$0 sm:$0xff]  ;;  %v517_v49 = vunpack.c.h.bf16 %v515_v36 }
   0xb   :  { %v593_v26 = vld [vmem:[%s767_s1 + $0x30] sm:$0xff]   ;;  %v597_v30 = vld [vmem:[%s767_s1 + $0x38] sm:$0xff]  }
   0xc   :  { %528 = vmatpush3.bf16.msra.mxu0 %v577_v10  ;;  %v594_v27 = vld [vmem:[%s767_s1 + $0xb0] sm:$0xff]   ;;  %v598_v31 = vld [vmem:[%s767_s1 + $0xb8] sm:$0xff]   ;;  %v39_v48 = vadd.f32 %v516_v37, %v471_v39  ;;  %v40_v56 = vadd.f32 %v517_v49, %v471_v39  ;;  %v508_v10 = vld [vmem:[%s771_s4] ss:$0 sm:$0xff] }
   0xd   :  { %550 = vmatpush3.bf16.msra.mxu1 %v578_v11  ;;  %529 = vmatprep.subr.bf16.mxu0 %v579_v12  ;;  %v599_v32 = vld [vmem:[%s768_s0] ss:$16 sps:$4 sm:$0xff]   ;;  %v601_v33 = vld [vmem:[%s768_s0 + $0x4] ss:$16 sps:$4 sm:$0xff]   ;;  %v602_v34 = vld [vmem:[%s768_s0 + $0x8] ss:$16 sps:$4 sm:$0xff]  }
   0xe   :  { %551 = vmatprep.subr.bf16.mxu1 %v580_v13  ;;  %v604_v35 = vld [vmem:[%s768_s0 + $0xc] ss:$16 sps:$4 sm:$0xff]   ;;  %357 = vmatprep.mubr.bf16.mxu0 %v601_v33 }
   0xf   :  { %398 = vmatprep.mubr.bf16.mxu1 %v604_v35 }
  0x10   :  { %530 = vmatpush3.bf16.msra.mxu0 %v581_v14  ;;  %v509_v14 = vld [vmem:[%s772_s5] ss:$0 sm:$0xff] }
  0x11   :  { %552 = vmatpush3.bf16.msra.mxu1 %v582_v15  ;;  %531 = vmatprep.subr.bf16.mxu0 %v583_v16 }
  0x12   :  { %553 = vmatprep.subr.bf16.mxu1 %v584_v17 }
  0x14   :  { %532 = vmatpush3.bf16.msra.mxu0 %v585_v18 }
  0x15   :  { %554 = vmatpush3.bf16.msra.mxu1 %v586_v19  ;;  %533 = vmatprep.subr.bf16.mxu0 %v587_v20 }
  0x16   :  { %555 = vmatprep.subr.bf16.mxu1 %v588_v21 }
  0x18   :  { %534 = vmatpush3.bf16.msra.mxu0 %v589_v22 }
  0x19   :  { %556 = vmatpush3.bf16.msra.mxu1 %v590_v23  ;;  %535 = vmatprep.subr.bf16.mxu0 %v591_v24 }
  0x1a   :  { %557 = vmatprep.subr.bf16.mxu1 %v592_v25 }
  0x1c   :  { %536 = vmatpush3.bf16.msra.mxu0 %v593_v26 }
  0x1d   :  { %558 = vmatpush3.bf16.msra.mxu1 %v594_v27  ;;  %537 = vmatprep.subr.bf16.mxu0 %v595_v28 }
  0x1e   :  { %559 = vmatprep.subr.bf16.mxu1 %v596_v29 }
  0x20   :  { %538 = vmatpush3.bf16.msra.mxu0 %v597_v30 }
  0x21   :  { %560 = vmatpush3.bf16.msra.mxu1 %v598_v31 }
  0x23   :  { %358 = vmatmul.mubr.bf16.vlgmr.msra.gmra.mrb[0].mxu0 %v599_v32 }
  0x24   :  { %399 = vmatmul.mubr.bf16.vlgmr.msra.gmra.mrb[0].mxu1 %v602_v34 }
  0xf6   :  { %v539_v38 = vpop.f32.mrb[0].mxu0 }
  0xf7   :  { %v561_v40 = vpop.f32.mrb[0].mxu1  ;;  %v540_v41 = vpop.f32.mrb[1].mxu0 }
  0xf8   :  { %v541_v42 = vadd.f32 %v540_v41, %v539_v38  ;;  %v562_v43 = vpop.f32.mrb[1].mxu1  ;;  %v542_v44 = vpop.f32.mrb[2].mxu0 }
  0xf9   :  { %v563_v45 = vadd.f32 %v562_v43, %v561_v40  ;;  %v564_v46 = vpop.f32.mrb[2].mxu1  ;;  %v543_v47 = vpop.f32.mrb[3].mxu0 }
  0xfa   :  { %v544_v50 = vadd.f32 %v543_v47, %v542_v44  ;;  %v565_v51 = vpop.f32.mrb[3].mxu1 }
  0xfb   :  { %v401_v52 = vadd.f32 %v563_v45, %v541_v42  ;;  %v566_v53 = vadd.f32 %v565_v51, %v564_v46 }
  0xfd   :  { %v404_v54 = vadd.f32 %v566_v53, %v544_v50  ;;  %v407_v55 = vadd.f32 %v401_v52, %v39_v48 }
  0xff   :  { %416 = vadd.xlane.f32.xlu0 %v407_v55  ;;  %v408_v57 = vadd.f32 %v404_v54, %v40_v56 }
 0x103   :  { %418 = vadd.xlane.f32.xlu0 %v408_v57 }
 0x18c   :  { %v417_v58 = vpop.xlane.xlu0 %416 }
 0x18d   :  { %v421_v59 = vmul.f32 0.0078125, %v417_v58 }
 0x18f   :  { %v423_v60 = vsub.f32 %v407_v55, %v421_v59 }
 0x190   :  { %v419_v61 = vpop.xlane.xlu0 %418 }
 0x191   :  { %v422_v62 = vmul.f32 0.0078125, %v419_v61  ;;  %v425_v63 = vmul.f32 %v423_v60, %v423_v60 }
 0x193   :  { %v424_v0 = vsub.f32 %v408_v57, %v422_v62  ;;  %427 = vadd.xlane.f32.xlu1 %v425_v63 }
 0x195   :  { %v426_v1 = vmul.f32 %v424_v0, %v424_v0 }
 0x197   :  { %429 = vadd.xlane.f32.xlu1 %v426_v1 }
 0x220   :  { %v428_v2 = vpop.xlane.xlu1 %427 }
 0x221   :  { %v431_v3 = vmul.f32 0.0078125, %v428_v2 }
 0x223   :  { %v433_v4 = vadd.f32 1e-12, %v431_v3 }
 0x224   :  { %v430_v5 = vpop.xlane.xlu1 %429 }
 0x225   :  { %605 = vrsqrt.f32 %v433_v4  ;;  %v432_v6 = vmul.f32 0.0078125, %v430_v5 }
 0x227   :  { %v434_v7 = vadd.f32 1e-12, %v432_v6 }
 0x229   :  { %607 = vrsqrt.f32 %v434_v7 }
 0x22f   :  { %v606_v8 = vpop.eup %605 }
 0x230   :  { %v437_v9 = vmul.f32 %v606_v8, %v423_v60 }
 0x232   :  { %v446_v12 = vmul.f32 %v508_v10, %v437_v9 }
 0x233   :  { %v608_v11 = vpop.eup %607 }
 0x234   :  { %v438_v13 = vmul.f32 %v608_v11, %v424_v0  ;;  %v455_v16 = vadd.f32 %v509_v14, %v446_v12 }
 0x236   :  { %v447_v15 = vmul.f32 %v508_v10, %v438_v13 }
 0x238   :  { %v456_v17 = vadd.f32 %v509_v14, %v447_v15 }
 0x23a   :  { %v521_v18 = vpack.c.bf16 %v456_v17, %v455_v16 }
 0x23c   :  { %522 = vst [vmem:[%s773_s6] sm:$0xff] %v521_v18  }

</bundles_post_ra>
